<compile_context>
chip_gen: v7x
topology: tpu7x:2x2x1
jax: 0.10.0
libtpu: 0.0.40
codegen_flags: <defaults>
</compile_context>

<pallas_src>
import math

import numpy as np

import jax
import jax.numpy as jnp
from jax.experimental import pallas as pl
from jax.experimental.pallas import tpu as pltpu


_BN_EPS = 1e-5
_LANE = 128


def _round_up(x, m):
    return ((x + m - 1) // m) * m


# ----------------------------- Pallas kernel -------------------------------

def _fused_mlp_kernel(x_ref, w1_ref, b1_ref, w2_ref, b2_ref, w3_ref, b3_ref,
                      wc_ref, bc_ref, out_ref, feat_ref):
    """Whole DeepCORAL eval forward for one batch tile, fully VMEM-resident.

    h1 = relu(x  @ W1' + b1')     (BN folded into W1', b1')
    h2 = relu(h1 @ W2' + b2')
    h3 = relu(h2 @ W3' + b3')     -> features output
    y  =       h3 @ Wc  + bc      -> classifier output (lane-padded to 128 cols)
    """
    x = x_ref[...].astype(jnp.bfloat16)
    h = jnp.dot(x, w1_ref[...], preferred_element_type=jnp.float32) + b1_ref[...]
    h = jnp.maximum(h, jnp.float32(0.0))

    h = jnp.dot(h.astype(jnp.bfloat16), w2_ref[...],
                preferred_element_type=jnp.float32) + b2_ref[...]
    h = jnp.maximum(h, jnp.float32(0.0))

    h = jnp.dot(h.astype(jnp.bfloat16), w3_ref[...],
                preferred_element_type=jnp.float32) + b3_ref[...]
    h = jnp.maximum(h, jnp.float32(0.0))
    feat_ref[...] = h.astype(feat_ref.dtype)

    y = jnp.dot(h.astype(jnp.bfloat16), wc_ref[...],
                preferred_element_type=jnp.float32) + bc_ref[...]
    out_ref[...] = y.astype(out_ref.dtype)


# --------------------------- parameter creation -----------------------------

def _linear_init(key, fan_in, fan_out):
    """PyTorch nn.Linear default init: U(-1/sqrt(fan_in), 1/sqrt(fan_in))."""
    kw, kb = jax.random.split(key)
    bound = 1.0 / math.sqrt(fan_in)
    w = jax.random.uniform(kw, (fan_in, fan_out), jnp.float32, -bound, bound)
    b = jax.random.uniform(kb, (fan_out,), jnp.float32, -bound, bound)
    return w, b


def _bn_eval_affine(num_features):
    """Fresh BatchNorm1d in eval mode: gamma=1, beta=0, running_mean=0, running_var=1."""
    gamma = jnp.ones((num_features,), jnp.float32)
    beta = jnp.zeros((num_features,), jnp.float32)
    running_mean = jnp.zeros((num_features,), jnp.float32)
    running_var = jnp.ones((num_features,), jnp.float32)
    scale = gamma / jnp.sqrt(running_var + _BN_EPS)
    shift = beta - running_mean * scale
    return scale, shift


def init_deep_coral_params(key, input_dim, num_classes):
    k1, k2, k3, k4 = jax.random.split(key, 4)
    dims = [(input_dim, 1024), (1024, 512), (512, 256)]
    feats = []
    for k, (din, dout) in zip((k1, k2, k3), dims):
        w, b = _linear_init(k, din, dout)
        scale, shift = _bn_eval_affine(dout)
        # Fold eval-mode BN affine into the Linear weights (done once, at init).
        w_folded = (w * scale[None, :]).astype(jnp.bfloat16)
        b_folded = (b * scale + shift).reshape(1, dout).astype(jnp.float32)
        feats.append({"w": w_folded, "b": b_folded})

    # classifier: xavier_normal_ weight, zero bias; zero-pad output cols to a lane multiple.
    std = math.sqrt(2.0 / (256 + num_classes))
    cw = std * jax.random.normal(k4, (256, num_classes), jnp.float32)
    dc = _round_up(max(num_classes, _LANE), _LANE)
    cw_pad = jnp.zeros((256, dc), jnp.float32).at[:, :num_classes].set(cw)
    cb_pad = jnp.zeros((1, dc), jnp.float32)

    return {
        "features": feats,
        "classifier": {"w": cw_pad.astype(jnp.bfloat16), "b": cb_pad,
                       "num_classes": num_classes},
    }


# ------------------------------- forward -----------------------------------

def deep_coral_forward(params, source):
    """Eval-mode DeepCORAL.forward(source): returns (source_outputs, source_features)."""
    B, din = source.shape
    f1, f2, f3 = params["features"]
    cls = params["classifier"]
    d1 = f1["w"].shape[1]
    d2 = f2["w"].shape[1]
    d3 = f3["w"].shape[1]
    dc = cls["w"].shape[1]          # lane-padded classifier width
    num_classes = cls["num_classes"]

    # Batch tiling: multiple of 8 sublanes; cap at 128 rows (full MXU occupancy on v5e,
    # still a good mem/compute balance on v6e/v7x).
    tile_b = min(128, _round_up(B, 8))
    b_pad = _round_up(B, tile_b)
    x = source.astype(jnp.float32)
    if b_pad != B:
        x = jnp.pad(x, ((0, b_pad - B), (0, 0)))

    batch_map = lambda i: (i, 0)    # activation / output tiles walk the batch
    const_map = lambda i: (0, 0)    # weights & biases stay VMEM-resident across tiles

    out_cls, out_feat = pl.pallas_call(
        _fused_mlp_kernel,
        out_shape=(jax.ShapeDtypeStruct((b_pad, dc), jnp.float32),
                   jax.ShapeDtypeStruct((b_pad, d3), jnp.float32)),
        grid=(b_pad // tile_b,),
        in_specs=[
            pl.BlockSpec((tile_b, din), batch_map),   # x
            pl.BlockSpec((din, d1), const_map),       # W1' (BN-folded, bf16)
            pl.BlockSpec((1, d1), const_map),         # b1'
            pl.BlockSpec((d1, d2), const_map),        # W2'
            pl.BlockSpec((1, d2), const_map),         # b2'
            pl.BlockSpec((d2, d3), const_map),        # W3'
            pl.BlockSpec((1, d3), const_map),         # b3'
            pl.BlockSpec((d3, dc), const_map),        # Wc (lane-padded, bf16)
            pl.BlockSpec((1, dc), const_map),         # bc
        ],
        out_specs=(pl.BlockSpec((tile_b, dc), batch_map),
                   pl.BlockSpec((tile_b, d3), batch_map)),
        compiler_params=pltpu.CompilerParams(dimension_semantics=("parallel",)),
    )(x, f1["w"], f1["b"], f2["w"], f2["b"], f3["w"], f3["b"], cls["w"], cls["b"])

    outputs = out_cls[:B, :num_classes]
    features = out_feat[:B]
    return outputs, features


# --------------------------- pure-JAX reference ------------------------------

def deep_coral_reference(params, source):
    """Plain-jnp eval forward using the same (BN-folded, bf16) parameters."""
    h = source.astype(jnp.float32)
    for layer in params["features"]:
        h = h @ layer["w"].astype(jnp.float32) + layer["b"]
        h = jnp.maximum(h, 0.0)
    feats = h
    cls = params["classifier"]
    out = h @ cls["w"].astype(jnp.float32) + cls["b"]
    return out[:, :cls["num_classes"]], feats


# --------------------------------- main -------------------------------------

if __name__ == "__main__":
    key = jax.random.PRNGKey(0)
    k_params, k_x = jax.random.split(key)

    batch = 8
    input_dim = 32
    num_classes = 4

    params = init_deep_coral_params(k_params, input_dim, num_classes)
    source = jax.random.normal(k_x, (batch, input_dim), jnp.float32)

    outputs, features = deep_coral_forward(params, source)
    jax.block_until_ready((outputs, features))

    assert outputs.shape == (batch, num_classes)
    assert features.shape == (batch, 256)
    assert bool(jnp.all(features >= 0.0))  # ReLU output

    # Correctness vs. pure-JAX reference (loose tolerance: bf16 activation casts in-kernel).
    ref_out, ref_feat = deep_coral_reference(params, source)
    np.testing.assert_allclose(np.asarray(outputs), np.asarray(ref_out),
                               rtol=2e-2, atol=2e-2)
    np.testing.assert_allclose(np.asarray(features), np.asarray(ref_feat),
                               rtol=2e-2, atol=2e-2)

    print("KERNEL_OK")
</pallas_src>

<mosaic_0001>
module attributes {stable_mosaic.version = 11 : i64} {
  func.func @_fused_mlp_kernel(%arg0: i32, %arg1: memref<8x32xf32, #tpu.memory_space<vmem>>, %arg2: memref<32x1024xbf16, #tpu.memory_space<vmem>>, %arg3: memref<1x1024xf32, #tpu.memory_space<vmem>>, %arg4: memref<1024x512xbf16, #tpu.memory_space<vmem>>, %arg5: memref<1x512xf32, #tpu.memory_space<vmem>>, %arg6: memref<512x256xbf16, #tpu.memory_space<vmem>>, %arg7: memref<1x256xf32, #tpu.memory_space<vmem>>, %arg8: memref<256x128xbf16, #tpu.memory_space<vmem>>, %arg9: memref<1x128xf32, #tpu.memory_space<vmem>>, %arg10: memref<8x128xf32, #tpu.memory_space<vmem>>, %arg11: memref<8x256xf32, #tpu.memory_space<vmem>>) attributes {dimension_semantics = [#tpu.dimension_semantics<parallel>], iteration_bounds = array<i64: 1>, scalar_prefetch = 0 : i64, scratch_operands = 0 : i64, tpu.core_type = #tpu.core_type<tc>, window_params = [{transform_indices = @transform_0, window_bounds = array<i64: 8, 32>}, {pipeline_mode = #tpu.pipeline_mode<synchronous>, transform_indices = @transform_1, window_bounds = array<i64: 32, 1024>}, {pipeline_mode = #tpu.pipeline_mode<synchronous>, transform_indices = @transform_2, window_bounds = array<i64: 1, 1024>}, {pipeline_mode = #tpu.pipeline_mode<synchronous>, transform_indices = @transform_3, window_bounds = array<i64: 1024, 512>}, {pipeline_mode = #tpu.pipeline_mode<synchronous>, transform_indices = @transform_4, window_bounds = array<i64: 1, 512>}, {pipeline_mode = #tpu.pipeline_mode<synchronous>, transform_indices = @transform_5, window_bounds = array<i64: 512, 256>}, {pipeline_mode = #tpu.pipeline_mode<synchronous>, transform_indices = @transform_6, window_bounds = array<i64: 1, 256>}, {pipeline_mode = #tpu.pipeline_mode<synchronous>, transform_indices = @transform_7, window_bounds = array<i64: 256, 128>}, {pipeline_mode = #tpu.pipeline_mode<synchronous>, transform_indices = @transform_8, window_bounds = array<i64: 1, 128>}, {transform_indices = @transform_9, window_bounds = array<i64: 8, 128>}, {transform_indices = @transform_10, window_bounds = array<i64: 8, 256>}]} {
    %c0 = arith.constant 0 : index
    %c0_0 = arith.constant 0 : index
    %0 = vector.load %arg1[%c0, %c0_0] : memref<8x32xf32, #tpu.memory_space<vmem>>, vector<8x32xf32>
    %1 = arith.truncf %0 : vector<8x32xf32> to vector<8x32xbf16>
    %c0_1 = arith.constant 0 : index
    %c0_2 = arith.constant 0 : index
    %2 = vector.load %arg2[%c0_1, %c0_2] : memref<32x1024xbf16, #tpu.memory_space<vmem>>, vector<32x1024xbf16>
    %cst = arith.constant dense<0.000000e+00> : vector<8x1024xf32>
    %3 = tpu.matmul %1, %2, %cst {dimension_numbers = #tpu.dot_dimension_numbers<[1], [0], [0], [1], [0, 0, 1, 1], [], []>} : vector<8x32xbf16>, vector<32x1024xbf16>, vector<8x1024xf32> -> vector<8x1024xf32>
    %c0_3 = arith.constant 0 : index
    %c0_4 = arith.constant 0 : index
    %4 = vector.load %arg3[%c0_3, %c0_4] : memref<1x1024xf32, #tpu.memory_space<vmem>>, vector<1x1024xf32>
    %5 = vector.broadcast %4 : vector<1x1024xf32> to vector<8x1024xf32>
    %6 = arith.addf %3, %5 : vector<8x1024xf32>
    %cst_5 = arith.constant 0.000000e+00 : f32
    %7 = vector.broadcast %cst_5 : f32 to vector<8x1024xf32>
    %8 = arith.maximumf %6, %7 : vector<8x1024xf32>
    %9 = arith.truncf %8 : vector<8x1024xf32> to vector<8x1024xbf16>
    %c0_6 = arith.constant 0 : index
    %c0_7 = arith.constant 0 : index
    %10 = vector.load %arg4[%c0_6, %c0_7] : memref<1024x512xbf16, #tpu.memory_space<vmem>>, vector<1024x512xbf16>
    %cst_8 = arith.constant dense<0.000000e+00> : vector<8x512xf32>
    %11 = tpu.matmul %9, %10, %cst_8 {dimension_numbers = #tpu.dot_dimension_numbers<[1], [0], [0], [1], [0, 0, 1, 1], [], []>} : vector<8x1024xbf16>, vector<1024x512xbf16>, vector<8x512xf32> -> vector<8x512xf32>
    %c0_9 = arith.constant 0 : index
    %c0_10 = arith.constant 0 : index
    %12 = vector.load %arg5[%c0_9, %c0_10] : memref<1x512xf32, #tpu.memory_space<vmem>>, vector<1x512xf32>
    %13 = vector.broadcast %12 : vector<1x512xf32> to vector<8x512xf32>
    %14 = arith.addf %11, %13 : vector<8x512xf32>
    %cst_11 = arith.constant 0.000000e+00 : f32
    %15 = vector.broadcast %cst_11 : f32 to vector<8x512xf32>
    %16 = arith.maximumf %14, %15 : vector<8x512xf32>
    %17 = arith.truncf %16 : vector<8x512xf32> to vector<8x512xbf16>
    %c0_12 = arith.constant 0 : index
    %c0_13 = arith.constant 0 : index
    %18 = vector.load %arg6[%c0_12, %c0_13] : memref<512x256xbf16, #tpu.memory_space<vmem>>, vector<512x256xbf16>
    %cst_14 = arith.constant dense<0.000000e+00> : vector<8x256xf32>
    %19 = tpu.matmul %17, %18, %cst_14 {dimension_numbers = #tpu.dot_dimension_numbers<[1], [0], [0], [1], [0, 0, 1, 1], [], []>} : vector<8x512xbf16>, vector<512x256xbf16>, vector<8x256xf32> -> vector<8x256xf32>
    %c0_15 = arith.constant 0 : index
    %c0_16 = arith.constant 0 : index
    %20 = vector.load %arg7[%c0_15, %c0_16] : memref<1x256xf32, #tpu.memory_space<vmem>>, vector<1x256xf32>
    %21 = vector.broadcast %20 : vector<1x256xf32> to vector<8x256xf32>
    %22 = arith.addf %19, %21 : vector<8x256xf32>
    %cst_17 = arith.constant 0.000000e+00 : f32
    %23 = vector.broadcast %cst_17 : f32 to vector<8x256xf32>
    %24 = arith.maximumf %22, %23 : vector<8x256xf32>
    %c0_18 = arith.constant 0 : index
    %c0_19 = arith.constant 0 : index
    %25 = vector.load %arg11[%c0_18, %c0_19] : memref<8x256xf32, #tpu.memory_space<vmem>>, vector<8x256xf32>
    tpu.vector_store %arg11[%c0_18, %c0_19], %24 {strides = array<i32>} : memref<8x256xf32, #tpu.memory_space<vmem>>, vector<8x256xf32>,
    %26 = arith.truncf %24 : vector<8x256xf32> to vector<8x256xbf16>
    %c0_20 = arith.constant 0 : index
    %c0_21 = arith.constant 0 : index
    %27 = vector.load %arg8[%c0_20, %c0_21] : memref<256x128xbf16, #tpu.memory_space<vmem>>, vector<256x128xbf16>
    %cst_22 = arith.constant dense<0.000000e+00> : vector<8x128xf32>
    %28 = tpu.matmul %26, %27, %cst_22 {dimension_numbers = #tpu.dot_dimension_numbers<[1], [0], [0], [1], [0, 0, 1, 1], [], []>} : vector<8x256xbf16>, vector<256x128xbf16>, vector<8x128xf32> -> vector<8x128xf32>
    %c0_23 = arith.constant 0 : index
    %c0_24 = arith.constant 0 : index
    %29 = vector.load %arg9[%c0_23, %c0_24] : memref<1x128xf32, #tpu.memory_space<vmem>>, vector<1x128xf32>
    %30 = vector.broadcast %29 : vector<1x128xf32> to vector<8x128xf32>
    %31 = arith.addf %28, %30 : vector<8x128xf32>
    %c0_25 = arith.constant 0 : index
    %c0_26 = arith.constant 0 : index
    %32 = vector.load %arg10[%c0_25, %c0_26] : memref<8x128xf32, #tpu.memory_space<vmem>>, vector<8x128xf32>
    tpu.vector_store %arg10[%c0_25, %c0_26], %31 {strides = array<i32>} : memref<8x128xf32, #tpu.memory_space<vmem>>, vector<8x128xf32>,
    return
  }
  func.func @transform_0(%arg0: i32) -> (i32, i32) {
    %c0_i32 = arith.constant 0 : i32
    %c0_i32_0 = arith.constant 0 : i32
    return %arg0, %c0_i32 : i32, i32
  }
  func.func @transform_1(%arg0: i32) -> (i32, i32) {
    %c0_i32 = arith.constant 0 : i32
    %c0_i32_0 = arith.constant 0 : i32
    %c0_i32_1 = arith.constant 0 : i32
    return %c0_i32, %c0_i32_0 : i32, i32
  }
  func.func @transform_2(%arg0: i32) -> (i32, i32) {
    %c0_i32 = arith.constant 0 : i32
    %c0_i32_0 = arith.constant 0 : i32
    %c0_i32_1 = arith.constant 0 : i32
    return %c0_i32, %c0_i32_0 : i32, i32
  }
  func.func @transform_3(%arg0: i32) -> (i32, i32) {
    %c0_i32 = arith.constant 0 : i32
    %c0_i32_0 = arith.constant 0 : i32
    %c0_i32_1 = arith.constant 0 : i32
    return %c0_i32, %c0_i32_0 : i32, i32
  }
  func.func @transform_4(%arg0: i32) -> (i32, i32) {
    %c0_i32 = arith.constant 0 : i32
    %c0_i32_0 = arith.constant 0 : i32
    %c0_i32_1 = arith.constant 0 : i32
    return %c0_i32, %c0_i32_0 : i32, i32
  }
  func.func @transform_5(%arg0: i32) -> (i32, i32) {
    %c0_i32 = arith.constant 0 : i32
    %c0_i32_0 = arith.constant 0 : i32
    %c0_i32_1 = arith.constant 0 : i32
    return %c0_i32, %c0_i32_0 : i32, i32
  }
  func.func @transform_6(%arg0: i32) -> (i32, i32) {
    %c0_i32 = arith.constant 0 : i32
    %c0_i32_0 = arith.constant 0 : i32
    %c0_i32_1 = arith.constant 0 : i32
    return %c0_i32, %c0_i32_0 : i32, i32
  }
  func.func @transform_7(%arg0: i32) -> (i32, i32) {
    %c0_i32 = arith.constant 0 : i32
    %c0_i32_0 = arith.constant 0 : i32
    %c0_i32_1 = arith.constant 0 : i32
    return %c0_i32, %c0_i32_0 : i32, i32
  }
  func.func @transform_8(%arg0: i32) -> (i32, i32) {
    %c0_i32 = arith.constant 0 : i32
    %c0_i32_0 = arith.constant 0 : i32
    %c0_i32_1 = arith.constant 0 : i32
    return %c0_i32, %c0_i32_0 : i32, i32
  }
  func.func @transform_9(%arg0: i32) -> (i32, i32) {
    %c0_i32 = arith.constant 0 : i32
    %c0_i32_0 = arith.constant 0 : i32
    return %arg0, %c0_i32 : i32, i32
  }
  func.func @transform_10(%arg0: i32) -> (i32, i32) {
    %c0_i32 = arith.constant 0 : i32
    %c0_i32_0 = arith.constant 0 : i32
    return %arg0, %c0_i32 : i32, i32
  }
}

</mosaic_0001>

<bundles_post_ra>
// kernel: tpu_custom_call.1
= control target key start
LH: loop header
LB: loop body
LE: loop exit
PB: predicated region body
PF: predicated region fallthrough
CT: control target
= control target key end

     0   :  { %16 = vsyncpa [#allocation3], 0  ;;  %s4409_s0 = inlined_call_operand.hbm [shape: f32[8,32], index: 0, kind: input, shape index: {}]   ;;  %s4410_s1 = inlined_call_operand.hbm [shape: bf16[32,1024], index: 1, kind: input, shape index: {}]   ;;  %s4411_s2 = inlined_call_operand.hbm [shape: f32[1,1024], index: 2, kind: input, shape index: {}]   ;;  %s4412_s3 = inlined_call_operand.hbm [shape: bf16[1024,512], index: 3, kind: input, shape index: {}]   ;;  %s4413_s4 = inlined_call_operand.vmem [shape: f32[1,512], index: 4, kind: input, shape index: {}]   ;;  %s4414_s5 = inlined_call_operand.hbm [shape: bf16[512,256], index: 5, kind: input, shape index: {}]   ;;  %s4415_s6 = inlined_call_operand.vmem [shape: f32[1,256], index: 6, kind: input, shape index: {}]   ;;  %s4416_s7 = inlined_call_operand.hbm [shape: bf16[256,128], index: 7, kind: input, shape index: {}]   ;;  %s4417_s8 = inlined_call_operand.vmem [shape: f32[1,128], index: 8, kind: input, shape index: {}]   ;;  %s4418_s9 = inlined_call_operand.hbm [shape: f32[8,128], index: 9, kind: output, shape index: {0}]   ;;  %s4419_s10 = inlined_call_operand.hbm [shape: f32[8,256], index: 10, kind: output, shape index: {1}]  }
   0x1   :  { %17 = vsyncpa [#allocation6], 0 }
   0x2   :  { %18 = vsyncpa [#allocation9], 0 }
   0x3   :  { %19 = vsyncpa [#allocation12], 0 }
   0x4   :  { %20 = vsyncpa [#allocation4], 0 }
   0x5   :  { %21 = vsyncpa [#allocation15], 0  ;;  %s4137_s13 = smov [#allocation5]   ;;  %s3949_s17 = scalar_lea.hbm %s4410_s1, 2048 }
   0x6   :  { %s37_s14 = sshll.u32 %s4137_s13, 4  ;;  %p3950_p0 = scmp.ne.s32.totalorder %s4410_s1, %s3949_s17  ;;  %s38_s14 = int_to_ptr.vmem [resolvable:$true] %s37_s14 }
   0x7   :  { %p3953_p1 = scmp.lt.u32.totalorder %s3949_s17, %s4410_s1 }
   0x9   :  { %p3955_p2 = pnand %p3953_p1, %p3950_p0 }
   0xb   :  { %3958 = shalt.err (!%p3955_p2)
}
   0xc   :  { %s3959_s22 = scalar_lea.vmem %s38_s14, 2048  ;;  %p3964_p4 = scmp.lt.s32.totalorder %s38_s14, %s38_s14 }
   0xd   :  { %p3960_p3 = scmp.ne.s32.totalorder %s38_s14, %s3959_s22  ;;  %p3965_p5 = scmp.lt.s32.totalorder %s3959_s22, %s3959_s22 }
   0xf   :  { %p3966_p6 = por %p3965_p5, %p3964_p4 }
  0x11   :  { %p3967_p7 = pnand %p3966_p6, %p3960_p3 }
  0x13   :  { %3970 = shalt.err (!%p3967_p7)
}
  0x14   :  { %s4138_s23 = smov 512   ;;  %s4139_s24 = smov 32  }
  0x15   :  { %43 = dma.hbm_to_vmem [thread:$0]  %s4410_s1, 2048, %s38_s14, [#allocation6], %s4138_s23, %s4138_s23, %s4139_s24  }
  0x16   :  { %s4140_s27 = smov [#allocation8]   ;;  %s3971_s11 = scalar_lea.hbm %s4412_s3, 32768 }
  0x17   :  { %s59_s28 = sshll.u32 %s4140_s27, 4  ;;  %p3972_p8 = scmp.ne.s32.totalorder %s4412_s3, %s3971_s11  ;;  %s60_s28 = int_to_ptr.vmem [resolvable:$true] %s59_s28 }
  0x18   :  { %p3975_p9 = scmp.lt.u32.totalorder %s3971_s11, %s4412_s3 }
  0x1a   :  { %p3977_p10 = pnand %p3975_p9, %p3972_p8 }
  0x1c   :  { %3980 = shalt.err (!%p3977_p10)
}
  0x1d   :  { %s3981_s17 = scalar_lea.vmem %s60_s28, 32768  ;;  %p3986_p12 = scmp.lt.s32.totalorder %s60_s28, %s60_s28 }
  0x1e   :  { %p3982_p11 = scmp.ne.s32.totalorder %s60_s28, %s3981_s17  ;;  %p3987_p13 = scmp.lt.s32.totalorder %s3981_s17, %s3981_s17 }
  0x20   :  { %p3988_p0 = por %p3987_p13, %p3986_p12 }
  0x22   :  { %p3989_p1 = pnand %p3988_p0, %p3982_p11 }
  0x24   :  { %3992 = shalt.err (!%p3989_p1)
}
  0x25   :  { %s4141_s1 = smov 256   ;;  %s4142_s14 = smov 16  }
  0x26   :  { %65 = dma.hbm_to_vmem [thread:$0]  %s4412_s3, 32768, %s60_s28, [#allocation9], %s4141_s1, %s4141_s1, %s4142_s14  }
  0x27   :  { %s4143_s20 = smov [#allocation2]   ;;  %s4144_s22 = smov [#allocation7]  }
  0x28   :  { %s28_s21 = sshll.u32 %s4143_s20, 4  ;;  %s50_s23 = sshll.u32 %s4144_s22, 4  ;;  %s29_s21 = int_to_ptr.vmem [resolvable:$true] %s28_s21  ;;  %s51_s23 = int_to_ptr.vmem [resolvable:$true] %s50_s23 }
  0x29   :  { %s3993_s26 = scalar_lea.hbm %s4409_s0, 128 }
  0x2a   :  { %p3994_p2 = scmp.ne.s32.totalorder %s4409_s0, %s3993_s26  ;;  %p3997_p3 = scmp.lt.u32.totalorder %s3993_s26, %s4409_s0 }
  0x2c   :  { %p3999_p4 = pnand %p3997_p3, %p3994_p2 }
  0x2e   :  { %4002 = shalt.err (!%p3999_p4)
}
  0x2f   :  { %s4003_s3 = scalar_lea.vmem %s29_s21, 128  ;;  %p4008_p6 = scmp.lt.s32.totalorder %s29_s21, %s29_s21 }
  0x30   :  { %p4004_p5 = scmp.ne.s32.totalorder %s29_s21, %s4003_s3  ;;  %p4009_p7 = scmp.lt.s32.totalorder %s4003_s3, %s4003_s3 }
  0x32   :  { %p4010_p8 = por %p4009_p7, %p4008_p6 }
  0x34   :  { %p4011_p9 = pnand %p4010_p8, %p4004_p5 }
  0x36   :  { %4014 = shalt.err (!%p4011_p9)
}
  0x37   :  { %31 = dma.hbm_to_vmem [thread:$0]  %s4409_s0, 128, %s29_s21, [#allocation3]  }
  0x38   :  { %s4015_s16 = scalar_lea.hbm %s4411_s2, 128 }
  0x39   :  { %p4016_p10 = scmp.ne.s32.totalorder %s4411_s2, %s4015_s16  ;;  %p4019_p11 = scmp.lt.u32.totalorder %s4015_s16, %s4411_s2 }
  0x3b   :  { %p4021_p12 = pnand %p4019_p11, %p4016_p10 }
  0x3d   :  { %4024 = shalt.err (!%p4021_p12)
}
  0x3e   :  { %s4025_s19 = scalar_lea.vmem %s51_s23, 128  ;;  %p4030_p0 = scmp.lt.s32.totalorder %s51_s23, %s51_s23 }
  0x3f   :  { %p4026_p13 = scmp.ne.s32.totalorder %s51_s23, %s4025_s19  ;;  %p4031_p1 = scmp.lt.s32.totalorder %s4025_s19, %s4025_s19 }
  0x41   :  { %p4032_p2 = por %p4031_p1, %p4030_p0 }
  0x43   :  { %p4033_p3 = pnand %p4032_p2, %p4026_p13 }
  0x45   :  { %4036 = shalt.err (!%p4033_p3)
}
  0x46   :  { %53 = dma.hbm_to_vmem [thread:$0]  %s4411_s2, 128, %s51_s23, [#allocation6]  }
  0x47   :  { %s4145_s21 = smov [#allocation10]   ;;  %s4037_s26 = scalar_lea.hbm %s4414_s5, 8192 }
  0x48   :  { %s73_s22 = sshll.u32 %s4145_s21, 4  ;;  %p4038_p4 = scmp.ne.s32.totalorder %s4414_s5, %s4037_s26  ;;  %s74_s22 = int_to_ptr.vmem [resolvable:$true] %s73_s22 }
  0x49   :  { %p4041_p5 = scmp.lt.u32.totalorder %s4037_s26, %s4414_s5 }
  0x4b   :  { %p4043_p6 = pnand %p4041_p5, %p4038_p4 }
  0x4d   :  { %4046 = shalt.err (!%p4043_p6)
}
  0x4e   :  { %s4047_s3 = scalar_lea.vmem %s74_s22, 8192  ;;  %p4052_p8 = scmp.lt.s32.totalorder %s74_s22, %s74_s22 }
  0x4f   :  { %p4048_p7 = scmp.ne.s32.totalorder %s74_s22, %s4047_s3  ;;  %p4053_p9 = scmp.lt.s32.totalorder %s4047_s3, %s4047_s3 }
  0x51   :  { %p4054_p10 = por %p4053_p9, %p4052_p8 }
  0x53   :  { %p4055_p11 = pnand %p4054_p10, %p4048_p7 }
  0x55   :  { %4058 = shalt.err (!%p4055_p11)
}
  0x56   :  { %s4146_s2 = smov 128   ;;  %s4147_s23 = smov 8  }
  0x57   :  { %79 = dma.hbm_to_vmem [thread:$0]  %s4414_s5, 8192, %s74_s22, [#allocation9], %s4146_s2, %s4146_s2, %s4147_s23  }
  0x58   :  { %s4148_s13 = smov [#allocation11]   ;;  %s4059_s1 = scalar_lea.hbm %s4416_s7, 2048 }
  0x59   :  { %s87_s15 = sshll.u32 %s4148_s13, 4  ;;  %p4060_p12 = scmp.ne.s32.totalorder %s4416_s7, %s4059_s1  ;;  %s88_s15 = int_to_ptr.vmem [resolvable:$true] %s87_s15 }
  0x5a   :  { %p4063_p13 = scmp.lt.u32.totalorder %s4059_s1, %s4416_s7 }
  0x5c   :  { %p4065_p0 = pnand %p4063_p13, %p4060_p12 }
  0x5e   :  { %4068 = shalt.err (!%p4065_p0)
}
  0x5f   :  { %s4069_s20 = scalar_lea.vmem %s88_s15, 2048  ;;  %p4074_p2 = scmp.lt.s32.totalorder %s88_s15, %s88_s15 }
  0x60   :  { %p4070_p1 = scmp.ne.s32.totalorder %s88_s15, %s4069_s20  ;;  %p4075_p3 = scmp.lt.s32.totalorder %s4069_s20, %s4069_s20 }
  0x62   :  { %p4076_p4 = por %p4075_p3, %p4074_p2 }
  0x64   :  { %p4077_p5 = pnand %p4076_p4, %p4070_p1 }
  0x66   :  { %4080 = shalt.err (!%p4077_p5)
}
  0x67   :  { %s4149_s5 = smov 64   ;;  %s4150_s21 = smov 4  }
  0x68   :  { %93 = dma.hbm_to_vmem [thread:$0]  %s4416_s7, 2048, %s88_s15, [#allocation12], %s4149_s5, %s4149_s5, %s4150_s21  }
  0x69   :  { %4125 = dma.done.wait [#allocation3], 128  }
  0x6a   :  { %4126 = vsyncadd [#allocation3], 4294967168 }
  0x6b   :  { %4127 = dma.done.wait [#allocation6], 2176  }
  0x6c   :  { %4128 = vsyncadd [#allocation6], 4294965120 }
  0x6d   :  { %4129 = dma.done.wait [#allocation9], 40960  }
  0x6e   :  { %4130 = vsyncadd [#allocation9], 4294926336 }
  0x6f   :  { %4131 = dma.done.wait [#allocation12], 2048  }
  0x70   :  { %4132 = vsyncadd [#allocation12], 4294965248  ;;  %v4151_v0 = vmov 0   ;;  %v117_v1 = vld [vmem:[#allocation5] sm:$0xff]  ;;  %v118_v8 = vld [vmem:[#allocation5 + $0x8] sm:$0xff]  ;;  %vm255_vm0 = vcmask 261120  }
  0x71   :  { %291 = vmatprep.mubr.bf16.mxu0 %v4151_v0  ;;  %v121_v2 = vld [vmem:[#allocation5 + $0x20] sm:$0xff]  ;;  %v122_v9 = vld [vmem:[#allocation5 + $0x28] sm:$0xff]  ;;  %v115_v11 = vld [vmem:[#allocation2] sm:$0xff]  ;;  %s4152_s27 = smov [#allocation14]  }
  0x72   :  { %v125_v3 = vld [vmem:[#allocation5 + $0x40] sm:$0xff]  ;;  %v3026_v4 = vcombine.high %v117_v1, %v121_v2  ;;  %v3025_v5 = vcombine.low %v117_v1, %v121_v2  ;;  %v3028_v12 = vcombine.high %v118_v8, %v122_v9  ;;  %v126_v13 = vld [vmem:[#allocation5 + $0x48] sm:$0xff]  ;;  %v4282_v17 = vpack.c.bf16 %v115_v11, %v115_v11  ;;  %v119_v22 = vld [vmem:[#allocation5 + $0x10] sm:$0xff] }
  0x73   :  { %v129_v6 = vld [vmem:[#allocation5 + $0x60] sm:$0xff]  ;;  %v130_v14 = vld [vmem:[#allocation5 + $0x68] sm:$0xff]  ;;  %v3027_v19 = vcombine.low %v118_v8, %v122_v9  ;;  %v123_v23 = vld [vmem:[#allocation5 + $0x30] sm:$0xff] }
  0x74   :  { %v3034_v7 = vcombine.high %v125_v3, %v129_v6  ;;  %259 = vmatprep.subr.bf16.mxu0 %v3026_v4  ;;  %v3033_v10 = vcombine.low %v125_v3, %v129_v6  ;;  %v3453_v15 = vld [vmem:[#allocation8 + $0x4] ss:$16 sps:$4 sm:$0xff]   ;;  %v3455_v16 = vld [vmem:[#allocation8] ss:$16 sps:$4 sm:$0xff]   ;;  %v3036_v20 = vcombine.high %v126_v13, %v130_v14  ;;  %v3035_v25 = vcombine.low %v126_v13, %v130_v14  ;;  %v127_v26 = vld [vmem:[#allocation5 + $0x50] sm:$0xff] }
  0x75   :  { %260 = vmatpush1.bf16.msra.mxu0 %v3025_v5  ;;  %v3456_v18 = vld [vmem:[#allocation8 + $0x24] ss:$16 sps:$4 sm:$0xff]   ;;  %1997 = vmatprep.subr.bf16.mxu1 %v3453_v15  ;;  %v3458_v21 = vld [vmem:[#allocation8 + $0x20] ss:$16 sps:$4 sm:$0xff]   ;;  %v3030_v27 = vcombine.high %v119_v22, %v123_v23  ;;  %v131_v28 = vld [vmem:[#allocation5 + $0x70] sm:$0xff]  ;;  %v3029_v31 = vcombine.low %v119_v22, %v123_v23 }
  0x76   :  { %261 = vmatprep.subr.bf16.mxu0 %v3034_v7  ;;  %1998 = vmatpush1.bf16.msra.mxu1 %v3455_v16  ;;  %v3459_v24 = vld [vmem:[#allocation8 + $0x44] ss:$16 sps:$4 sm:$0xff]   ;;  %v3464_v29 = vld [vmem:[#allocation8 + $0x40] ss:$16 sps:$4 sm:$0xff]   ;;  %v3038_v32 = vcombine.high %v127_v26, %v131_v28  ;;  %v3037_v37 = vcombine.low %v127_v26, %v131_v28 }
  0x77   :  { %1999 = vmatprep.subr.bf16.mxu1 %v3456_v18  ;;  %v3465_v30 = vld [vmem:[#allocation8 + $0x64] ss:$16 sps:$4 sm:$0xff]   ;;  %v3470_v33 = vld [vmem:[#allocation8 + $0x60] ss:$16 sps:$4 sm:$0xff]  }
  0x78   :  { %v120_v34 = vld [vmem:[#allocation5 + $0x18] sm:$0xff] }
  0x79   :  { %262 = vmatpush1.bf16.msra.mxu0 %v3033_v10  ;;  %v124_v35 = vld [vmem:[#allocation5 + $0x38] sm:$0xff] }
  0x7a   :  { %300 = vmatprep.subr.bf16.mxu0 %v3028_v12  ;;  %2000 = vmatpush1.bf16.msra.mxu1 %v3458_v21  ;;  %v3471_v36 = vld [vmem:[#allocation8 + $0x84] ss:$16 sps:$4 sm:$0xff]   ;;  %v3032_v39 = vcombine.high %v120_v34, %v124_v35  ;;  %v3476_v41 = vld [vmem:[#allocation8 + $0x80] ss:$16 sps:$4 sm:$0xff]   ;;  %v3031_v43 = vcombine.low %v120_v34, %v124_v35 }
  0x7b   :  { %2001 = vmatprep.subr.bf16.mxu1 %v3459_v24  ;;  %v128_v38 = vld [vmem:[#allocation5 + $0x58] sm:$0xff] }
  0x7c   :  { %3041 = vmatmul.mubr.msk.bf16.vlgmr.msra.gmra.mrb[0].mxu0 %vm255_vm0, %v4282_v17  ;;  %v132_v40 = vld [vmem:[#allocation5 + $0x78] sm:$0xff] }
  0x7d   :  { %301 = vmatpush1.bf16.msra.mxu0 %v3027_v19  ;;  %332 = vmatprep.mubr.bf16.mxu0 %v4151_v0  ;;  %v3477_v42 = vld [vmem:[#allocation8 + $0xa4] ss:$16 sps:$4 sm:$0xff]   ;;  %v3040_v44 = vcombine.high %v128_v38, %v132_v40  ;;  %v3482_v45 = vld [vmem:[#allocation8 + $0xa0] ss:$16 sps:$4 sm:$0xff]   ;;  %v3039_v47 = vcombine.low %v128_v38, %v132_v40  ;;  %v4300_v40 = vld [vmem:[#allocation7] sm:$0xff] }
  0x7e   :  { %302 = vmatprep.subr.bf16.mxu0 %v3036_v20  ;;  %2002 = vmatpush1.bf16.msra.mxu1 %v3464_v29  ;;  %v3483_v46 = vld [vmem:[#allocation8 + $0xc4] ss:$16 sps:$4 sm:$0xff]   ;;  %v3488_v49 = vld [vmem:[#allocation8 + $0xc0] ss:$16 sps:$4 sm:$0xff]  }
  0x7f   :  { %2003 = vmatprep.subr.bf16.mxu1 %v3465_v30  ;;  %v3463_v48 = vld [vmem:[#allocation8 + $0x204] ss:$16 sps:$4 sm:$0xff]   ;;  %v3461_v51 = vld [vmem:[#allocation8 + $0x200] ss:$16 sps:$4 sm:$0xff]  }
  0x80   :  { %v3489_v50 = vld [vmem:[#allocation8 + $0xe4] ss:$16 sps:$4 sm:$0xff]   ;;  %v3494_v53 = vld [vmem:[#allocation8 + $0xe0] ss:$16 sps:$4 sm:$0xff]  }
  0x81   :  { %303 = vmatpush1.bf16.msra.mxu0 %v3035_v25  ;;  %v3469_v52 = vld [vmem:[#allocation8 + $0x224] ss:$16 sps:$4 sm:$0xff]   ;;  %v3467_v55 = vld [vmem:[#allocation8 + $0x220] ss:$16 sps:$4 sm:$0xff]  }
  0x82   :  { %341 = vmatprep.subr.bf16.mxu0 %v3030_v27  ;;  %2004 = vmatpush1.bf16.msra.mxu1 %v3470_v33  ;;  %v3495_v54 = vld [vmem:[#allocation8 + $0x104] ss:$16 sps:$4 sm:$0xff]   ;;  %v3500_v57 = vld [vmem:[#allocation8 + $0x100] ss:$16 sps:$4 sm:$0xff]  }
  0x83   :  { %2005 = vmatprep.subr.bf16.mxu1 %v3471_v36  ;;  %v3475_v56 = vld [vmem:[#allocation8 + $0x244] ss:$16 sps:$4 sm:$0xff]   ;;  %v3473_v59 = vld [vmem:[#allocation8 + $0x240] ss:$16 sps:$4 sm:$0xff]  }
  0x84   :  { %3042 = vmatmul.mubr.msk.bf16.vlgmr.msra.gmra.mrb[4].mxu0 %vm255_vm0, %v4282_v17  ;;  %v3501_v58 = vld [vmem:[#allocation8 + $0x124] ss:$16 sps:$4 sm:$0xff]   ;;  %v3506_v61 = vld [vmem:[#allocation8 + $0x120] ss:$16 sps:$4 sm:$0xff]  }
  0x85   :  { %342 = vmatpush1.bf16.msra.mxu0 %v3029_v31  ;;  %373 = vmatprep.mubr.bf16.mxu0 %v4151_v0  ;;  %v3481_v60 = vld [vmem:[#allocation8 + $0x264] ss:$16 sps:$4 sm:$0xff]   ;;  %v3479_v63 = vld [vmem:[#allocation8 + $0x260] ss:$16 sps:$4 sm:$0xff]  }
  0x86   :  { %343 = vmatprep.subr.bf16.mxu0 %v3038_v32  ;;  %2006 = vmatpush1.bf16.msra.mxu1 %v3476_v41  ;;  %v3507_v62 = vld [vmem:[#allocation8 + $0x144] ss:$16 sps:$4 sm:$0xff]   ;;  %v3512_v1 = vld [vmem:[#allocation8 + $0x140] ss:$16 sps:$4 sm:$0xff]   ;;  %v3548_v32 = vld [vmem:[#allocation8 + $0xc] ss:$16 sps:$4 sm:$0xff]  }
  0x87   :  { %2007 = vmatprep.subr.bf16.mxu1 %v3477_v42  ;;  %v3513_v2 = vld [vmem:[#allocation8 + $0x164] ss:$16 sps:$4 sm:$0xff]   ;;  %v3485_v3 = vld [vmem:[#allocation8 + $0x280] ss:$16 sps:$4 sm:$0xff]  }
  0x88   :  { %v3493_v4 = vld [vmem:[#allocation8 + $0x2a4] ss:$16 sps:$4 sm:$0xff]   ;;  %v3518_v5 = vld [vmem:[#allocation8 + $0x160] ss:$16 sps:$4 sm:$0xff]  }
  0x89   :  { %344 = vmatpush1.bf16.msra.mxu0 %v3037_v37  ;;  %v3519_v6 = vld [vmem:[#allocation8 + $0x184] ss:$16 sps:$4 sm:$0xff]   ;;  %v3491_v7 = vld [vmem:[#allocation8 + $0x2a0] ss:$16 sps:$4 sm:$0xff]   ;;  %v135_v37 = vlaneseq }
  0x8a   :  { %382 = vmatprep.subr.bf16.mxu0 %v3032_v39  ;;  %2008 = vmatpush1.bf16.msra.mxu1 %v3482_v45  ;;  %v3499_v8 = vld [vmem:[#allocation8 + $0x2c4] ss:$16 sps:$4 sm:$0xff]   ;;  %v3524_v9 = vld [vmem:[#allocation8 + $0x180] ss:$16 sps:$4 sm:$0xff]  }
  0x8b   :  { %2009 = vmatprep.subr.bf16.mxu1 %v3483_v46  ;;  %v3525_v10 = vld [vmem:[#allocation8 + $0x1a4] ss:$16 sps:$4 sm:$0xff]   ;;  %v3497_v11 = vld [vmem:[#allocation8 + $0x2c0] ss:$16 sps:$4 sm:$0xff]   ;;  %v4295_v38 = vshrl.u32 %v135_v37, 7 }
  0x8c   :  { %3043 = vmatmul.mubr.msk.bf16.vlgmr.msra.gmra.mrb[8].mxu0 %vm255_vm0, %v4282_v17  ;;  %v3505_v12 = vld [vmem:[#allocation8 + $0x2e4] ss:$16 sps:$4 sm:$0xff]   ;;  %v3530_v13 = vld [vmem:[#allocation8 + $0x1a0] ss:$16 sps:$4 sm:$0xff]  }
  0x8d   :  { %383 = vmatpush1.bf16.msra.mxu0 %v3031_v43  ;;  %414 = vmatprep.mubr.bf16.mxu0 %v4151_v0  ;;  %v3487_v0 = vld [vmem:[#allocation8 + $0x284] ss:$16 sps:$4 sm:$0xff]   ;;  %v3503_v14 = vld [vmem:[#allocation8 + $0x2e0] ss:$16 sps:$4 sm:$0xff]   ;;  %v4298_v39 = vsub.s32 0, %v4295_v38  ;;  %v4303_v41 = vsub.s32 1, %v4295_v38 }
  0x8e   :  { %384 = vmatprep.subr.bf16.mxu0 %v3040_v44  ;;  %2010 = vmatpush1.bf16.msra.mxu1 %v3488_v49  ;;  %v3511_v15 = vld [vmem:[#allocation8 + $0x304] ss:$16 sps:$4 sm:$0xff]   ;;  %v3509_v16 = vld [vmem:[#allocation8 + $0x300] ss:$16 sps:$4 sm:$0xff]  }
  0x8f   :  { %2011 = vmatprep.subr.bf16.mxu1 %v3489_v50  ;;  %v3515_v18 = vld [vmem:[#allocation8 + $0x320] ss:$16 sps:$4 sm:$0xff]   ;;  %v3523_v19 = vld [vmem:[#allocation8 + $0x344] ss:$16 sps:$4 sm:$0xff]   ;;  %v138_v42 = vrot.slane %v4300_v40, %v4298_v39  ;;  %v142_v43 = vrot.slane %v4300_v40, %v4303_v41  ;;  %v149_v50 = vsub.s32 3, %v4295_v38 }
  0x90   :  { %v3521_v20 = vld [vmem:[#allocation8 + $0x340] ss:$16 sps:$4 sm:$0xff]   ;;  %v3529_v21 = vld [vmem:[#allocation8 + $0x364] ss:$16 sps:$4 sm:$0xff]  }
  0x91   :  { %385 = vmatpush1.bf16.msra.mxu0 %v3039_v47  ;;  %v3527_v22 = vld [vmem:[#allocation8 + $0x360] ss:$16 sps:$4 sm:$0xff]   ;;  %v3531_v23 = vld [vmem:[#allocation8 + $0x1c4] ss:$16 sps:$4 sm:$0xff]   ;;  %v145_v47 = vsub.s32 2, %v4295_v38 }
  0x92   :  { %2038 = vmatprep.subr.bf16.mxu0 %v3463_v48  ;;  %2012 = vmatpush1.bf16.msra.mxu1 %v3494_v53  ;;  %v3535_v24 = vld [vmem:[#allocation8 + $0x384] ss:$16 sps:$4 sm:$0xff]   ;;  %v3533_v25 = vld [vmem:[#allocation8 + $0x380] ss:$16 sps:$4 sm:$0xff]  }
  0x93   :  { %2013 = vmatprep.subr.bf16.mxu1 %v3495_v54  ;;  %v3536_v26 = vld [vmem:[#allocation8 + $0x1c0] ss:$16 sps:$4 sm:$0xff]   ;;  %v3537_v27 = vld [vmem:[#allocation8 + $0x1e4] ss:$16 sps:$4 sm:$0xff]   ;;  %v146_v54 = vrot.slane %v4300_v40, %v145_v47 }
  0x94   :  { %3044 = vmatmul.mubr.msk.bf16.vlgmr.msra.gmra.mrb[12].mxu0 %vm255_vm0, %v4282_v17  ;;  %v3517_v17 = vld [vmem:[#allocation8 + $0x324] ss:$16 sps:$4 sm:$0xff]   ;;  %v3539_v29 = vld [vmem:[#allocation8 + $0x3a0] ss:$16 sps:$4 sm:$0xff]  }
  0x95   :  { %2039 = vmatpush1.bf16.msra.mxu0 %v3461_v51  ;;  %v3541_v28 = vld [vmem:[#allocation8 + $0x3a4] ss:$16 sps:$4 sm:$0xff]   ;;  %v3542_v30 = vld [vmem:[#allocation8 + $0x1e0] ss:$16 sps:$4 sm:$0xff]  }
  0x96   :  { %2040 = vmatprep.subr.bf16.mxu0 %v3469_v52  ;;  %2014 = vmatpush1.bf16.msra.mxu1 %v3500_v57  ;;  %v3545_v31 = vld [vmem:[#allocation8 + $0x3c4] ss:$16 sps:$4 sm:$0xff]   ;;  %v3543_v33 = vld [vmem:[#allocation8 + $0x3c0] ss:$16 sps:$4 sm:$0xff]   ;;  %v150_v57 = vrot.slane %v4300_v40, %v149_v50 }
  0x97   :  { %2015 = vmatprep.subr.bf16.mxu1 %v3501_v58  ;;  %v3551_v34 = vld [vmem:[#allocation8 + $0x3e4] ss:$16 sps:$4 sm:$0xff]   ;;  %v3549_v35 = vld [vmem:[#allocation8 + $0x3e0] ss:$16 sps:$4 sm:$0xff]  }
  0x98   :  { %v3557_v36 = vld [vmem:[#allocation8 + $0x404] ss:$16 sps:$4 sm:$0xff]   ;;  %v3579_v37 = vld [vmem:[#allocation8 + $0x480] ss:$16 sps:$4 sm:$0xff]  }
  0x99   :  { %2041 = vmatpush1.bf16.msra.mxu0 %v3467_v55 }
  0x9a   :  { %2042 = vmatprep.subr.bf16.mxu0 %v3475_v56  ;;  %2016 = vmatpush1.bf16.msra.mxu1 %v3506_v61  ;;  %v3546_v56 = vld [vmem:[#allocation8 + $0x8] ss:$16 sps:$4 sm:$0xff]  }
  0x9b   :  { %2017 = vmatprep.subr.bf16.mxu1 %v3507_v62 }
  0x9d   :  { %2043 = vmatpush1.bf16.msra.mxu0 %v3473_v59  ;;  %v3554_v59 = vld [vmem:[#allocation8 + $0x2c] ss:$16 sps:$4 sm:$0xff]  }
  0x9e   :  { %2044 = vmatprep.subr.bf16.mxu0 %v3481_v60  ;;  %2018 = vmatpush1.bf16.msra.mxu1 %v3512_v1 }
  0x9f   :  { %2019 = vmatprep.subr.bf16.mxu1 %v3513_v2  ;;  %v157_v2 = vsub.s32 5, %v4295_v38 }
  0xa1   :  { %2045 = vmatpush1.bf16.msra.mxu0 %v3479_v63 }
  0xa2   :  { %2046 = vmatprep.subr.bf16.mxu0 %v3487_v0  ;;  %2020 = vmatpush1.bf16.msra.mxu1 %v3518_v5  ;;  %v3552_v0 = vld [vmem:[#allocation8 + $0x28] ss:$16 sps:$4 sm:$0xff]  }
  0xa3   :  { %2021 = vmatprep.subr.bf16.mxu1 %v3519_v6 }
  0xa5   :  { %2047 = vmatpush1.bf16.msra.mxu0 %v3485_v3 }
  0xa6   :  { %2048 = vmatprep.subr.bf16.mxu0 %v3493_v4  ;;  %2022 = vmatpush1.bf16.msra.mxu1 %v3524_v9  ;;  %v3560_v4 = vld [vmem:[#allocation8 + $0x4c] ss:$16 sps:$4 sm:$0xff]   ;;  %v3555_v9 = vld [vmem:[#allocation8 + $0x400] ss:$16 sps:$4 sm:$0xff]  }
  0xa7   :  { %2023 = vmatprep.subr.bf16.mxu1 %v3525_v10  ;;  %v3558_v10 = vld [vmem:[#allocation8 + $0x48] ss:$16 sps:$4 sm:$0xff]  }
  0xa9   :  { %2049 = vmatpush1.bf16.msra.mxu0 %v3491_v7 }
  0xaa   :  { %2050 = vmatprep.subr.bf16.mxu0 %v3499_v8  ;;  %2024 = vmatpush1.bf16.msra.mxu1 %v3530_v13  ;;  %v3566_v13 = vld [vmem:[#allocation8 + $0x6c] ss:$16 sps:$4 sm:$0xff]  }
  0xab   :  { %2025 = vmatprep.subr.bf16.mxu1 %v3531_v23 }
  0xad   :  { %2051 = vmatpush1.bf16.msra.mxu0 %v3497_v11  ;;  %v158_v11 = vrot.slane %v4300_v40, %v157_v2  ;;  %v3617_v2 = vld [vmem:[#allocation8 + $0x544] ss:$16 sps:$4 sm:$0xff]  }
  0xae   :  { %2052 = vmatprep.subr.bf16.mxu0 %v3505_v12  ;;  %2026 = vmatpush1.bf16.msra.mxu1 %v3536_v26  ;;  %v3563_v12 = vld [vmem:[#allocation8 + $0x424] ss:$16 sps:$4 sm:$0xff]  }
  0xaf   :  { %2027 = vmatprep.subr.bf16.mxu1 %v3537_v27  ;;  %v3575_v27 = vld [vmem:[#allocation8 + $0x464] ss:$16 sps:$4 sm:$0xff]  }
  0xb1   :  { %2053 = vmatpush1.bf16.msra.mxu0 %v3503_v14 }
  0xb2   :  { %2054 = vmatprep.subr.bf16.mxu0 %v3511_v15  ;;  %2028 = vmatpush1.bf16.msra.mxu1 %v3542_v30 }
  0xb3   :  { %2161 = vmatprep.subr.bf16.mxu1 %v3548_v32  ;;  %v3576_v32 = vld [vmem:[#allocation8 + $0xa8] ss:$16 sps:$4 sm:$0xff]  }
  0xb5   :  { %2055 = vmatpush1.bf16.msra.mxu0 %v3509_v16  ;;  %v3561_v16 = vld [vmem:[#allocation8 + $0x420] ss:$16 sps:$4 sm:$0xff]  }
  0xb6   :  { %2056 = vmatprep.subr.bf16.mxu0 %v3517_v17  ;;  %v3564_v17 = vld [vmem:[#allocation8 + $0x68] ss:$16 sps:$4 sm:$0xff]  }
  0xb9   :  { %2057 = vmatpush1.bf16.msra.mxu0 %v3515_v18 }
  0xba   :  { %2058 = vmatprep.subr.bf16.mxu0 %v3523_v19 }
  0xbd   :  { %2059 = vmatpush1.bf16.msra.mxu0 %v3521_v20  ;;  %v3569_v20 = vld [vmem:[#allocation8 + $0x444] ss:$16 sps:$4 sm:$0xff]  }
  0xbe   :  { %2060 = vmatprep.subr.bf16.mxu0 %v3529_v21  ;;  %v3572_v21 = vld [vmem:[#allocation8 + $0x8c] ss:$16 sps:$4 sm:$0xff]  }
  0xc1   :  { %2061 = vmatpush1.bf16.msra.mxu0 %v3527_v22 }
  0xc2   :  { %2062 = vmatprep.subr.bf16.mxu0 %v3535_v24  ;;  %v3567_v24 = vld [vmem:[#allocation8 + $0x440] ss:$16 sps:$4 sm:$0xff]  }
  0xc5   :  { %2063 = vmatpush1.bf16.msra.mxu0 %v3533_v25  ;;  %v3570_v25 = vld [vmem:[#allocation8 + $0x88] ss:$16 sps:$4 sm:$0xff]  }
  0xc6   :  { %2064 = vmatprep.subr.bf16.mxu0 %v3541_v28  ;;  %v3578_v28 = vld [vmem:[#allocation8 + $0xac] ss:$16 sps:$4 sm:$0xff]  }
  0xc9   :  { %2065 = vmatpush1.bf16.msra.mxu0 %v3539_v29 }
  0xca   :  { %2066 = vmatprep.subr.bf16.mxu0 %v3545_v31  ;;  %v3573_v31 = vld [vmem:[#allocation8 + $0x460] ss:$16 sps:$4 sm:$0xff]  }
  0xcd   :  { %2067 = vmatpush1.bf16.msra.mxu0 %v3543_v33 }
  0xce   :  { %2068 = vmatprep.subr.bf16.mxu0 %v3551_v34  ;;  %v3581_v34 = vld [vmem:[#allocation8 + $0x484] ss:$16 sps:$4 sm:$0xff]  }
  0xd1   :  { %2069 = vmatpush1.bf16.msra.mxu0 %v3549_v35  ;;  %v3584_v35 = vld [vmem:[#allocation8 + $0xcc] ss:$16 sps:$4 sm:$0xff]  }
  0xd2   :  { %2079 = vmatprep.subr.bf16.mxu0 %v3557_v36 }
 0x14f   :  { %v293_v44 = vpop.f32.mrb[0].mxu0 }
 0x150   :  { %v294_v45 = vadd.f32 %v293_v44, %v138_v42  ;;  %v295_v46 = vpop.f32.mrb[1].mxu0  ;;  %v3582_v42 = vld [vmem:[#allocation8 + $0xc8] ss:$16 sps:$4 sm:$0xff]   ;;  %v3590_v44 = vld [vmem:[#allocation8 + $0xec] ss:$16 sps:$4 sm:$0xff]  }
 0x151   :  { %v296_v48 = vadd.f32 %v295_v46, %v142_v43  ;;  %v297_v49 = vpop.f32.mrb[2].mxu0  ;;  %v3587_v43 = vld [vmem:[#allocation8 + $0x4a4] ss:$16 sps:$4 sm:$0xff]   ;;  %v3588_v46 = vld [vmem:[#allocation8 + $0xe8] ss:$16 sps:$4 sm:$0xff]  }
 0x152   :  { %v423_v51 = vmax.f32 %v294_v45, 0.0  ;;  %v298_v52 = vpop.f32.mrb[3].mxu0  ;;  %v3585_v45 = vld [vmem:[#allocation8 + $0x4a0] ss:$16 sps:$4 sm:$0xff]   ;;  %v3596_v49 = vld [vmem:[#allocation8 + $0x10c] ss:$16 sps:$4 sm:$0xff]  }
 0x153   :  { %v424_v53 = vmax.f32 %v296_v48, 0.0  ;;  %v3593_v48 = vld [vmem:[#allocation8 + $0x4c4] ss:$16 sps:$4 sm:$0xff]   ;;  %v3594_v52 = vld [vmem:[#allocation8 + $0x108] ss:$16 sps:$4 sm:$0xff]  }
 0x154   :  { %v4317_v58 = vpack.c.bf16 %v423_v51, %v423_v51  ;;  %v3591_v51 = vld [vmem:[#allocation8 + $0x4c0] ss:$16 sps:$4 sm:$0xff]  }
 0x155   :  { %v432_v55 = vpack.c.bf16 %v424_v53, %v424_v53  ;;  %v3599_v53 = vld [vmem:[#allocation8 + $0x4e4] ss:$16 sps:$4 sm:$0xff]  }
 0x157   :  { %v334_v60 = vpop.f32.mrb[4].mxu0  ;;  %2029 = vmatprep.mubr.bf16.mxu1 %v432_v55 }
 0x158   :  { %v335_v61 = vadd.f32 %v334_v60, %v146_v54  ;;  %v336_v62 = vpop.f32.mrb[5].mxu0  ;;  %2030 = vmatmul.mubr.bf16.vlgmr.msra.gmra.mrb[0].mxu1 %v4317_v58  ;;  %v3602_v54 = vld [vmem:[#allocation8 + $0x12c] ss:$16 sps:$4 sm:$0xff]   ;;  %v3603_v60 = vld [vmem:[#allocation8 + $0x500] ss:$16 sps:$4 sm:$0xff]  }
 0x159   :  { %v337_v63 = vadd.f32 %v336_v62, %v150_v57  ;;  %2162 = vmatpush1.bf16.msra.mxu1 %v3546_v56  ;;  %2193 = vmatprep.mubr.bf16.mxu1 %v432_v55  ;;  %v338_v1 = vpop.f32.mrb[6].mxu0  ;;  %v3597_v55 = vld [vmem:[#allocation8 + $0x4e0] ss:$16 sps:$4 sm:$0xff]   ;;  %v3600_v56 = vld [vmem:[#allocation8 + $0x128] ss:$16 sps:$4 sm:$0xff]  }
 0x15a   :  { %v425_v3 = vmax.f32 %v335_v61, 0.0  ;;  %2163 = vmatprep.subr.bf16.mxu1 %v3554_v59  ;;  %v339_v5 = vpop.f32.mrb[7].mxu0  ;;  %v3605_v57 = vld [vmem:[#allocation8 + $0x504] ss:$16 sps:$4 sm:$0xff]   ;;  %v3608_v59 = vld [vmem:[#allocation8 + $0x14c] ss:$16 sps:$4 sm:$0xff]  }
 0x15b   :  { %v426_v6 = vmax.f32 %v337_v63, 0.0  ;;  %v3606_v61 = vld [vmem:[#allocation8 + $0x148] ss:$16 sps:$4 sm:$0xff]   ;;  %v3611_v62 = vld [vmem:[#allocation8 + $0x524] ss:$16 sps:$4 sm:$0xff]  }
 0x15c   :  { %v4321_v7 = vpack.c.bf16 %v425_v3, %v425_v3  ;;  %v3614_v63 = vld [vmem:[#allocation8 + $0x16c] ss:$16 sps:$4 sm:$0xff]   ;;  %v3612_v1 = vld [vmem:[#allocation8 + $0x168] ss:$16 sps:$4 sm:$0xff]  }
 0x15d   :  { %v4323_v8 = vpack.c.bf16 %v426_v6, %v426_v6  ;;  %2164 = vmatpush1.bf16.msra.mxu1 %v3552_v0  ;;  %v3609_v0 = vld [vmem:[#allocation8 + $0x520] ss:$16 sps:$4 sm:$0xff]   ;;  %v3620_v3 = vld [vmem:[#allocation8 + $0x18c] ss:$16 sps:$4 sm:$0xff]   ;;  %v3618_v5 = vld [vmem:[#allocation8 + $0x188] ss:$16 sps:$4 sm:$0xff]  }
 0x15e   :  { %2165 = vmatprep.subr.bf16.mxu1 %v3560_v4  ;;  %v3615_v4 = vld [vmem:[#allocation8 + $0x540] ss:$16 sps:$4 sm:$0xff]   ;;  %v3623_v6 = vld [vmem:[#allocation8 + $0x564] ss:$16 sps:$4 sm:$0xff]  }
 0x15f   :  { %2070 = vmatprep.mubr.bf16.mxu0 %v4323_v8  ;;  %v4327_v14 = vpop.f32.mrb[8].mxu0 }
 0x160   :  { %2071 = vmatmul.mubr.bf16.vlgmr.msra.gmra.mrb[16].mxu0 %v4321_v7  ;;  %v377_v15 = vpop.f32.mrb[9].mxu0 }
 0x161   :  { %2080 = vmatpush1.bf16.msra.mxu0 %v3555_v9  ;;  %2166 = vmatpush1.bf16.msra.mxu1 %v3558_v10  ;;  %v378_v18 = vadd.f32 %v377_v15, %v158_v11  ;;  %v379_v19 = vpop.f32.mrb[10].mxu0  ;;  %v3626_v9 = vld [vmem:[#allocation8 + $0x1ac] ss:$16 sps:$4 sm:$0xff]   ;;  %v3621_v10 = vld [vmem:[#allocation8 + $0x560] ss:$16 sps:$4 sm:$0xff]   ;;  %v153_v15 = vsub.s32 4, %v4295_v38 }
 0x162   :  { %2081 = vmatprep.subr.bf16.mxu0 %v3563_v12  ;;  %2167 = vmatprep.subr.bf16.mxu1 %v3566_v13  ;;  %v380_v22 = vpop.f32.mrb[11].mxu0  ;;  %v3624_v11 = vld [vmem:[#allocation8 + $0x1a8] ss:$16 sps:$4 sm:$0xff]   ;;  %v3629_v12 = vld [vmem:[#allocation8 + $0x584] ss:$16 sps:$4 sm:$0xff]  }
 0x163   :  { %v428_v23 = vmax.f32 %v378_v18, 0.0  ;;  %v3632_v13 = vld [vmem:[#allocation8 + $0x1cc] ss:$16 sps:$4 sm:$0xff]   ;;  %v3635_v18 = vld [vmem:[#allocation8 + $0x5a4] ss:$16 sps:$4 sm:$0xff]  }
 0x164   :  { %v3638_v19 = vld [vmem:[#allocation8 + $0x1ec] ss:$16 sps:$4 sm:$0xff]   ;;  %v3633_v22 = vld [vmem:[#allocation8 + $0x5a0] ss:$16 sps:$4 sm:$0xff]  }
 0x165   :  { %2082 = vmatpush1.bf16.msra.mxu0 %v3561_v16  ;;  %2168 = vmatpush1.bf16.msra.mxu1 %v3564_v17  ;;  %v4330_v26 = vpack.c.bf16 %v428_v23, %v428_v23  ;;  %v3627_v16 = vld [vmem:[#allocation8 + $0x580] ss:$16 sps:$4 sm:$0xff]   ;;  %v3630_v17 = vld [vmem:[#allocation8 + $0x1c8] ss:$16 sps:$4 sm:$0xff]  }
 0x166   :  { %2083 = vmatprep.subr.bf16.mxu0 %v3569_v20  ;;  %2169 = vmatprep.subr.bf16.mxu1 %v3572_v21  ;;  %v165_v20 = vsub.s32 7, %v4295_v38  ;;  %v154_v21 = vrot.slane %v4300_v40, %v153_v15  ;;  %v3636_v23 = vld [vmem:[#allocation8 + $0x1e8] ss:$16 sps:$4 sm:$0xff]  }
 0x167   :  { %2111 = vmatprep.mubr.bf16.mxu0 %v4330_v26  ;;  %v4333_v29 = vpop.f32.mrb[12].mxu0  ;;  %v3696_v15 = vld [vmem:[#allocation8 + $0x328] ss:$16 sps:$4 sm:$0xff]  }
 0x168   :  { %v4335_v30 = vpop.f32.mrb[13].mxu0 }
 0x169   :  { %2084 = vmatpush1.bf16.msra.mxu0 %v3567_v24  ;;  %2170 = vmatpush1.bf16.msra.mxu1 %v3570_v25  ;;  %v420_v33 = vpop.f32.mrb[14].mxu0  ;;  %v3641_v24 = vld [vmem:[#allocation8 + $0x5c4] ss:$16 sps:$4 sm:$0xff]   ;;  %v3644_v25 = vld [vmem:[#allocation8 + $0x20c] ss:$16 sps:$4 sm:$0xff]  }
 0x16a   :  { %2085 = vmatprep.subr.bf16.mxu0 %v3575_v27  ;;  %2171 = vmatprep.subr.bf16.mxu1 %v3578_v28  ;;  %v421_v36 = vpop.f32.mrb[15].mxu0  ;;  %v166_v27 = vrot.slane %v4300_v40, %v165_v20  ;;  %v376_v28 = vadd.f32 %v4327_v14, %v154_v21  ;;  %v3647_v33 = vld [vmem:[#allocation8 + $0x5e4] ss:$16 sps:$4 sm:$0xff]   ;;  %v3710_v21 = vld [vmem:[#allocation8 + $0x36c] ss:$16 sps:$4 sm:$0xff]  }
 0x16b   :  { %v3653_v14 = vld [vmem:[#allocation8 + $0x604] ss:$16 sps:$4 sm:$0xff]  }
 0x16c   :  { %v427_v36 = vmax.f32 %v376_v28, 0.0  ;;  %v3707_v20 = vld [vmem:[#allocation8 + $0x724] ss:$16 sps:$4 sm:$0xff]   ;;  %v3714_v28 = vld [vmem:[#allocation8 + $0x388] ss:$16 sps:$4 sm:$0xff]  }
 0x16d   :  { %2086 = vmatpush1.bf16.msra.mxu0 %v3573_v31  ;;  %2172 = vmatpush1.bf16.msra.mxu1 %v3576_v32  ;;  %v3639_v31 = vld [vmem:[#allocation8 + $0x5c0] ss:$16 sps:$4 sm:$0xff]   ;;  %v3642_v32 = vld [vmem:[#allocation8 + $0x208] ss:$16 sps:$4 sm:$0xff]  }
 0x16e   :  { %2087 = vmatprep.subr.bf16.mxu0 %v3581_v34  ;;  %2173 = vmatprep.subr.bf16.mxu1 %v3584_v35  ;;  %v3650_v34 = vld [vmem:[#allocation8 + $0x22c] ss:$16 sps:$4 sm:$0xff]   ;;  %v419_v35 = vadd.f32 %v4335_v30, %v166_v27  ;;  %v3654_v30 = vld [vmem:[#allocation8 + $0x248] ss:$16 sps:$4 sm:$0xff]   ;;  %v3711_v27 = vld [vmem:[#allocation8 + $0x740] ss:$16 sps:$4 sm:$0xff]  }
 0x171   :  { %2088 = vmatpush1.bf16.msra.mxu0 %v3579_v37  ;;  %2174 = vmatpush1.bf16.msra.mxu1 %v3582_v42  ;;  %v3645_v37 = vld [vmem:[#allocation8 + $0x5e0] ss:$16 sps:$4 sm:$0xff]   ;;  %v3648_v42 = vld [vmem:[#allocation8 + $0x228] ss:$16 sps:$4 sm:$0xff]  }
 0x172   :  { %2089 = vmatprep.subr.bf16.mxu0 %v3587_v43  ;;  %2175 = vmatprep.subr.bf16.mxu1 %v3590_v44  ;;  %v3656_v43 = vld [vmem:[#allocation8 + $0x24c] ss:$16 sps:$4 sm:$0xff]   ;;  %v430_v44 = vmax.f32 %v419_v35, 0.0  ;;  %v3725_v35 = vld [vmem:[#allocation8 + $0x784] ss:$16 sps:$4 sm:$0xff]  }
 0x175   :  { %2090 = vmatpush1.bf16.msra.mxu0 %v3585_v45  ;;  %2176 = vmatpush1.bf16.msra.mxu1 %v3588_v46  ;;  %v4345_v45 = vpack.c.bf16 %v427_v36, %v427_v36  ;;  %v3651_v46 = vld [vmem:[#allocation8 + $0x600] ss:$16 sps:$4 sm:$0xff]   ;;  %v3728_v36 = vld [vmem:[#allocation8 + $0x3cc] ss:$16 sps:$4 sm:$0xff]  }
 0x176   :  { %2091 = vmatprep.subr.bf16.mxu0 %v3593_v48  ;;  %2177 = vmatprep.subr.bf16.mxu1 %v3596_v49  ;;  %v3662_v48 = vld [vmem:[#allocation8 + $0x26c] ss:$16 sps:$4 sm:$0xff]   ;;  %v4347_v49 = vpack.c.bf16 %v430_v44, %v430_v44 }
 0x177   :  { %v3734_v44 = vld [vmem:[#allocation8 + $0x3ec] ss:$16 sps:$4 sm:$0xff]  }
 0x179   :  { %2092 = vmatpush1.bf16.msra.mxu0 %v3591_v51  ;;  %2178 = vmatpush1.bf16.msra.mxu1 %v3594_v52  ;;  %v3660_v51 = vld [vmem:[#allocation8 + $0x268] ss:$16 sps:$4 sm:$0xff]   ;;  %v3665_v52 = vld [vmem:[#allocation8 + $0x644] ss:$16 sps:$4 sm:$0xff]  }
 0x17a   :  { %2093 = vmatprep.subr.bf16.mxu0 %v3599_v53  ;;  %2179 = vmatprep.subr.bf16.mxu1 %v3602_v54  ;;  %v3668_v53 = vld [vmem:[#allocation8 + $0x28c] ss:$16 sps:$4 sm:$0xff]   ;;  %v3663_v54 = vld [vmem:[#allocation8 + $0x640] ss:$16 sps:$4 sm:$0xff]  }
 0x17d   :  { %2094 = vmatpush1.bf16.msra.mxu0 %v3597_v55  ;;  %2180 = vmatpush1.bf16.msra.mxu1 %v3600_v56  ;;  %v3666_v55 = vld [vmem:[#allocation8 + $0x288] ss:$16 sps:$4 sm:$0xff]   ;;  %v3671_v56 = vld [vmem:[#allocation8 + $0x664] ss:$16 sps:$4 sm:$0xff]  }
 0x17e   :  { %2095 = vmatprep.subr.bf16.mxu0 %v3605_v57  ;;  %2181 = vmatprep.subr.bf16.mxu1 %v3608_v59  ;;  %v3674_v57 = vld [vmem:[#allocation8 + $0x2ac] ss:$16 sps:$4 sm:$0xff]   ;;  %v3669_v59 = vld [vmem:[#allocation8 + $0x660] ss:$16 sps:$4 sm:$0xff]  }
 0x181   :  { %2096 = vmatpush1.bf16.msra.mxu0 %v3603_v60  ;;  %2182 = vmatpush1.bf16.msra.mxu1 %v3606_v61  ;;  %v3672_v60 = vld [vmem:[#allocation8 + $0x2a8] ss:$16 sps:$4 sm:$0xff]   ;;  %v3677_v61 = vld [vmem:[#allocation8 + $0x684] ss:$16 sps:$4 sm:$0xff]  }
 0x182   :  { %2097 = vmatprep.subr.bf16.mxu0 %v3611_v62  ;;  %2183 = vmatprep.subr.bf16.mxu1 %v3614_v63  ;;  %v3680_v62 = vld [vmem:[#allocation8 + $0x2cc] ss:$16 sps:$4 sm:$0xff]   ;;  %v3675_v63 = vld [vmem:[#allocation8 + $0x680] ss:$16 sps:$4 sm:$0xff]  }
 0x185   :  { %2098 = vmatpush1.bf16.msra.mxu0 %v3609_v0  ;;  %2184 = vmatpush1.bf16.msra.mxu1 %v3612_v1  ;;  %v3678_v0 = vld [vmem:[#allocation8 + $0x2c8] ss:$16 sps:$4 sm:$0xff]   ;;  %v3683_v1 = vld [vmem:[#allocation8 + $0x6a4] ss:$16 sps:$4 sm:$0xff]  }
 0x186   :  { %2099 = vmatprep.subr.bf16.mxu0 %v3617_v2  ;;  %2185 = vmatprep.subr.bf16.mxu1 %v3620_v3  ;;  %v3686_v2 = vld [vmem:[#allocation8 + $0x2ec] ss:$16 sps:$4 sm:$0xff]   ;;  %v3681_v3 = vld [vmem:[#allocation8 + $0x6a0] ss:$16 sps:$4 sm:$0xff]  }
 0x189   :  { %2100 = vmatpush1.bf16.msra.mxu0 %v3615_v4  ;;  %2186 = vmatpush1.bf16.msra.mxu1 %v3618_v5  ;;  %v3684_v4 = vld [vmem:[#allocation8 + $0x2e8] ss:$16 sps:$4 sm:$0xff]   ;;  %v3689_v5 = vld [vmem:[#allocation8 + $0x6c4] ss:$16 sps:$4 sm:$0xff]  }
 0x18a   :  { %2101 = vmatprep.subr.bf16.mxu0 %v3623_v6  ;;  %2187 = vmatprep.subr.bf16.mxu1 %v3626_v9  ;;  %v3692_v6 = vld [vmem:[#allocation8 + $0x30c] ss:$16 sps:$4 sm:$0xff]   ;;  %v3687_v9 = vld [vmem:[#allocation8 + $0x6c0] ss:$16 sps:$4 sm:$0xff]  }
 0x18d   :  { %2102 = vmatpush1.bf16.msra.mxu0 %v3621_v10  ;;  %2188 = vmatpush1.bf16.msra.mxu1 %v3624_v11  ;;  %v3690_v10 = vld [vmem:[#allocation8 + $0x308] ss:$16 sps:$4 sm:$0xff]   ;;  %v3695_v11 = vld [vmem:[#allocation8 + $0x6e4] ss:$16 sps:$4 sm:$0xff]  }
 0x18e   :  { %2103 = vmatprep.subr.bf16.mxu0 %v3629_v12  ;;  %2189 = vmatprep.subr.bf16.mxu1 %v3632_v13  ;;  %v3698_v12 = vld [vmem:[#allocation8 + $0x32c] ss:$16 sps:$4 sm:$0xff]   ;;  %v3693_v13 = vld [vmem:[#allocation8 + $0x6e0] ss:$16 sps:$4 sm:$0xff]  }
 0x191   :  { %2104 = vmatpush1.bf16.msra.mxu0 %v3627_v16  ;;  %2190 = vmatpush1.bf16.msra.mxu1 %v3630_v17  ;;  %v3701_v16 = vld [vmem:[#allocation8 + $0x704] ss:$16 sps:$4 sm:$0xff]   ;;  %v3704_v17 = vld [vmem:[#allocation8 + $0x34c] ss:$16 sps:$4 sm:$0xff]  }
 0x192   :  { %2105 = vmatprep.subr.bf16.mxu0 %v3635_v18  ;;  %2191 = vmatprep.subr.bf16.mxu1 %v3638_v19  ;;  %v3699_v18 = vld [vmem:[#allocation8 + $0x700] ss:$16 sps:$4 sm:$0xff]   ;;  %v3702_v19 = vld [vmem:[#allocation8 + $0x348] ss:$16 sps:$4 sm:$0xff]  }
 0x195   :  { %2106 = vmatpush1.bf16.msra.mxu0 %v3633_v22  ;;  %2192 = vmatpush1.bf16.msra.mxu1 %v3636_v23  ;;  %v3705_v22 = vld [vmem:[#allocation8 + $0x720] ss:$16 sps:$4 sm:$0xff]   ;;  %v3708_v23 = vld [vmem:[#allocation8 + $0x368] ss:$16 sps:$4 sm:$0xff]  }
 0x196   :  { %2107 = vmatprep.subr.bf16.mxu0 %v3641_v24  ;;  %2202 = vmatprep.subr.bf16.mxu1 %v3644_v25  ;;  %v3713_v24 = vld [vmem:[#allocation8 + $0x744] ss:$16 sps:$4 sm:$0xff]   ;;  %v3716_v25 = vld [vmem:[#allocation8 + $0x38c] ss:$16 sps:$4 sm:$0xff]  }
 0x198   :  { %2194 = vmatmul.mubr.bf16.vlgmr.msra.gmra.mrb[4].mxu1 %v4317_v58  ;;  %v3659_v58 = vld [vmem:[#allocation8 + $0x624] ss:$16 sps:$4 sm:$0xff]  }
 0x199   :  { %2108 = vmatpush1.bf16.msra.mxu0 %v3639_v31  ;;  %2203 = vmatpush1.bf16.msra.mxu1 %v3642_v32  ;;  %v3719_v31 = vld [vmem:[#allocation8 + $0x764] ss:$16 sps:$4 sm:$0xff]   ;;  %v3722_v32 = vld [vmem:[#allocation8 + $0x3ac] ss:$16 sps:$4 sm:$0xff]  }
 0x19a   :  { %2234 = vmatprep.mubr.bf16.mxu1 %v4323_v8  ;;  %2109 = vmatprep.subr.bf16.mxu0 %v3647_v33  ;;  %v3657_v8 = vld [vmem:[#allocation8 + $0x620] ss:$16 sps:$4 sm:$0xff]  }
 0x19b   :  { %2204 = vmatprep.subr.bf16.mxu1 %v3650_v34  ;;  %v3717_v33 = vld [vmem:[#allocation8 + $0x760] ss:$16 sps:$4 sm:$0xff]   ;;  %v3720_v34 = vld [vmem:[#allocation8 + $0x3a8] ss:$16 sps:$4 sm:$0xff]  }
 0x19d   :  { %2110 = vmatpush1.bf16.msra.mxu0 %v3645_v37  ;;  %2205 = vmatpush1.bf16.msra.mxu1 %v3648_v42  ;;  %v161_v37 = vsub.s32 6, %v4295_v38  ;;  %v3723_v42 = vld [vmem:[#allocation8 + $0x780] ss:$16 sps:$4 sm:$0xff]   ;;  %v3948_v38 = vld [vmem:[#allocation11 + $0x38] sm:$0xff]  }
 0x19e   :  { %2120 = vmatprep.subr.bf16.mxu0 %v3653_v14  ;;  %2206 = vmatprep.subr.bf16.mxu1 %v3656_v43  ;;  %v3726_v14 = vld [vmem:[#allocation8 + $0x3c8] ss:$16 sps:$4 sm:$0xff]   ;;  %v3731_v43 = vld [vmem:[#allocation8 + $0x7a4] ss:$16 sps:$4 sm:$0xff]  }
 0x1a0   :  { %2112 = vmatmul.mubr.bf16.vlgmr.msra.gmra.mrb[16].mxu0 %v4345_v45 }
 0x1a1   :  { %2121 = vmatpush1.bf16.msra.mxu0 %v3651_v46  ;;  %2207 = vmatpush1.bf16.msra.mxu1 %v3654_v30  ;;  %v162_v46 = vrot.slane %v4300_v40, %v161_v37  ;;  %v3729_v30 = vld [vmem:[#allocation8 + $0x7a0] ss:$16 sps:$4 sm:$0xff]   ;;  %v3774_v37 = vld [vmem:[#allocation8 + $0x568] ss:$16 sps:$4 sm:$0xff]  }
 0x1a2   :  { %2122 = vmatprep.subr.bf16.mxu0 %v3659_v58  ;;  %2208 = vmatprep.subr.bf16.mxu1 %v3662_v48  ;;  %v3732_v58 = vld [vmem:[#allocation8 + $0x3e8] ss:$16 sps:$4 sm:$0xff]   ;;  %v3737_v48 = vld [vmem:[#allocation8 + $0x7c4] ss:$16 sps:$4 sm:$0xff]   ;;  %v3741_v40 = vld [vmem:[#allocation8 + $0x7e0] ss:$16 sps:$4 sm:$0xff]  }
 0x1a3   :  { %2152 = vmatprep.mubr.bf16.mxu0 %v4347_v49 }
 0x1a5   :  { %2123 = vmatpush1.bf16.msra.mxu0 %v3657_v8  ;;  %2209 = vmatpush1.bf16.msra.mxu1 %v3660_v51  ;;  %v3740_v8 = vld [vmem:[#allocation8 + $0x40c] ss:$16 sps:$4 sm:$0xff]   ;;  %v417_v51 = vadd.f32 %v4333_v29, %v162_v46  ;;  %v3867_v46 = vld [vmem:[#allocation10 + $0xa0] ss:$8 sps:$4 sm:$0xff]  }
 0x1a6   :  { %2124 = vmatprep.subr.bf16.mxu0 %v3665_v52  ;;  %2210 = vmatprep.subr.bf16.mxu1 %v3668_v53  ;;  %v3735_v52 = vld [vmem:[#allocation8 + $0x7c0] ss:$16 sps:$4 sm:$0xff]   ;;  %v3738_v53 = vld [vmem:[#allocation8 + $0x408] ss:$16 sps:$4 sm:$0xff]   ;;  %v3839_v29 = vld [vmem:[#allocation10 + $0x4] ss:$8 sps:$4 sm:$0xff]  }
 0x1a9   :  { %2125 = vmatpush1.bf16.msra.mxu0 %v3663_v54  ;;  %2211 = vmatpush1.bf16.msra.mxu1 %v3666_v55  ;;  %v3743_v54 = vld [vmem:[#allocation8 + $0x7e4] ss:$16 sps:$4 sm:$0xff]   ;;  %v3746_v55 = vld [vmem:[#allocation8 + $0x42c] ss:$16 sps:$4 sm:$0xff]  }
 0x1aa   :  { %2126 = vmatprep.subr.bf16.mxu0 %v3671_v56  ;;  %2212 = vmatprep.subr.bf16.mxu1 %v3674_v57  ;;  %v429_v56 = vmax.f32 %v417_v51, 0.0  ;;  %v3744_v57 = vld [vmem:[#allocation8 + $0x428] ss:$16 sps:$4 sm:$0xff]   ;;  %v3785_v51 = vld [vmem:[#allocation8 + $0x5cc] ss:$16 sps:$4 sm:$0xff]  }
 0x1ad   :  { %2127 = vmatpush1.bf16.msra.mxu0 %v3669_v59  ;;  %2213 = vmatpush1.bf16.msra.mxu1 %v3672_v60  ;;  %v3749_v59 = vld [vmem:[#allocation8 + $0x44c] ss:$16 sps:$4 sm:$0xff]   ;;  %v4356_v60 = vpack.c.bf16 %v429_v56, %v429_v56 }
 0x1ae   :  { %2128 = vmatprep.subr.bf16.mxu0 %v3677_v61  ;;  %2214 = vmatprep.subr.bf16.mxu1 %v3680_v62  ;;  %v3747_v61 = vld [vmem:[#allocation8 + $0x448] ss:$16 sps:$4 sm:$0xff]   ;;  %v3878_v56 = vld [vmem:[#allocation10 + $0xd4] ss:$8 sps:$4 sm:$0xff]  }
 0x1af   :  { %v3837_v62 = vld [vmem:[#allocation10] ss:$8 sps:$4 sm:$0xff]  }
 0x1b1   :  { %2129 = vmatpush1.bf16.msra.mxu0 %v3675_v63  ;;  %2215 = vmatpush1.bf16.msra.mxu1 %v3678_v0  ;;  %v3752_v63 = vld [vmem:[#allocation8 + $0x46c] ss:$16 sps:$4 sm:$0xff]   ;;  %v3750_v0 = vld [vmem:[#allocation8 + $0x468] ss:$16 sps:$4 sm:$0xff]  }
 0x1b2   :  { %2130 = vmatprep.subr.bf16.mxu0 %v3683_v1  ;;  %2216 = vmatprep.subr.bf16.mxu1 %v3686_v2  ;;  %v3755_v1 = vld [vmem:[#allocation8 + $0x48c] ss:$16 sps:$4 sm:$0xff]  }
 0x1b3   :  { %v3845_v2 = vld [vmem:[#allocation10 + $0x24] ss:$8 sps:$4 sm:$0xff]  }
 0x1b5   :  { %2131 = vmatpush1.bf16.msra.mxu0 %v3681_v3  ;;  %2217 = vmatpush1.bf16.msra.mxu1 %v3684_v4  ;;  %v3753_v3 = vld [vmem:[#allocation8 + $0x488] ss:$16 sps:$4 sm:$0xff]  }
 0x1b6   :  { %2132 = vmatprep.subr.bf16.mxu0 %v3689_v5  ;;  %2218 = vmatprep.subr.bf16.mxu1 %v3692_v6  ;;  %v3843_v4 = vld [vmem:[#allocation10 + $0x20] ss:$8 sps:$4 sm:$0xff]   ;;  %v3758_v5 = vld [vmem:[#allocation8 + $0x4ac] ss:$16 sps:$4 sm:$0xff]  }
 0x1b7   :  { %v3848_v6 = vld [vmem:[#allocation10 + $0x34] ss:$8 sps:$4 sm:$0xff]  }
 0x1b9   :  { %2133 = vmatpush1.bf16.msra.mxu0 %v3687_v9  ;;  %2219 = vmatpush1.bf16.msra.mxu1 %v3690_v10  ;;  %v3756_v9 = vld [vmem:[#allocation8 + $0x4a8] ss:$16 sps:$4 sm:$0xff]  }
 0x1ba   :  { %2134 = vmatprep.subr.bf16.mxu0 %v3695_v11  ;;  %2220 = vmatprep.subr.bf16.mxu1 %v3698_v12  ;;  %v3846_v10 = vld [vmem:[#allocation10 + $0x30] ss:$8 sps:$4 sm:$0xff]   ;;  %v3761_v11 = vld [vmem:[#allocation8 + $0x4cc] ss:$16 sps:$4 sm:$0xff]  }
 0x1bb   :  { %v3851_v12 = vld [vmem:[#allocation10 + $0x44] ss:$8 sps:$4 sm:$0xff]  }
 0x1bd   :  { %2135 = vmatpush1.bf16.msra.mxu0 %v3693_v13  ;;  %2221 = vmatpush1.bf16.msra.mxu1 %v3696_v15  ;;  %v3759_v13 = vld [vmem:[#allocation8 + $0x4c8] ss:$16 sps:$4 sm:$0xff]  }
 0x1be   :  { %2136 = vmatprep.subr.bf16.mxu0 %v3701_v16  ;;  %2222 = vmatprep.subr.bf16.mxu1 %v3704_v17  ;;  %v3849_v15 = vld [vmem:[#allocation10 + $0x40] ss:$8 sps:$4 sm:$0xff]   ;;  %v3764_v16 = vld [vmem:[#allocation8 + $0x4ec] ss:$16 sps:$4 sm:$0xff]  }
 0x1bf   :  { %v3854_v17 = vld [vmem:[#allocation10 + $0x54] ss:$8 sps:$4 sm:$0xff]  }
 0x1c1   :  { %2137 = vmatpush1.bf16.msra.mxu0 %v3699_v18  ;;  %2223 = vmatpush1.bf16.msra.mxu1 %v3702_v19  ;;  %v3762_v18 = vld [vmem:[#allocation8 + $0x4e8] ss:$16 sps:$4 sm:$0xff]  }
 0x1c2   :  { %2138 = vmatprep.subr.bf16.mxu0 %v3707_v20  ;;  %2224 = vmatprep.subr.bf16.mxu1 %v3710_v21  ;;  %v3852_v19 = vld [vmem:[#allocation10 + $0x50] ss:$8 sps:$4 sm:$0xff]   ;;  %v3767_v20 = vld [vmem:[#allocation8 + $0x50c] ss:$16 sps:$4 sm:$0xff]  }
 0x1c3   :  { %v3857_v21 = vld [vmem:[#allocation10 + $0x64] ss:$8 sps:$4 sm:$0xff]  }
 0x1c5   :  { %2139 = vmatpush1.bf16.msra.mxu0 %v3705_v22  ;;  %2225 = vmatpush1.bf16.msra.mxu1 %v3708_v23  ;;  %v3765_v22 = vld [vmem:[#allocation8 + $0x508] ss:$16 sps:$4 sm:$0xff]  }
 0x1c6   :  { %2140 = vmatprep.subr.bf16.mxu0 %v3713_v24  ;;  %2226 = vmatprep.subr.bf16.mxu1 %v3716_v25  ;;  %v3855_v23 = vld [vmem:[#allocation10 + $0x60] ss:$8 sps:$4 sm:$0xff]   ;;  %v3770_v24 = vld [vmem:[#allocation8 + $0x52c] ss:$16 sps:$4 sm:$0xff]  }
 0x1c7   :  { %v3860_v25 = vld [vmem:[#allocation10 + $0x74] ss:$8 sps:$4 sm:$0xff]  }
 0x1c9   :  { %2141 = vmatpush1.bf16.msra.mxu0 %v3711_v27  ;;  %2227 = vmatpush1.bf16.msra.mxu1 %v3714_v28  ;;  %v3768_v27 = vld [vmem:[#allocation8 + $0x528] ss:$16 sps:$4 sm:$0xff]  }
 0x1ca   :  { %2142 = vmatprep.subr.bf16.mxu0 %v3719_v31  ;;  %2228 = vmatprep.subr.bf16.mxu1 %v3722_v32  ;;  %v3858_v28 = vld [vmem:[#allocation10 + $0x70] ss:$8 sps:$4 sm:$0xff]   ;;  %v3773_v31 = vld [vmem:[#allocation8 + $0x54c] ss:$16 sps:$4 sm:$0xff]  }
 0x1cb   :  { %v3863_v32 = vld [vmem:[#allocation10 + $0x84] ss:$8 sps:$4 sm:$0xff]  }
 0x1cd   :  { %2143 = vmatpush1.bf16.msra.mxu0 %v3717_v33  ;;  %2229 = vmatpush1.bf16.msra.mxu1 %v3720_v34  ;;  %v3771_v33 = vld [vmem:[#allocation8 + $0x548] ss:$16 sps:$4 sm:$0xff]  }
 0x1ce   :  { %2144 = vmatprep.subr.bf16.mxu0 %v3725_v35  ;;  %2230 = vmatprep.subr.bf16.mxu1 %v3728_v36  ;;  %v3861_v34 = vld [vmem:[#allocation10 + $0x80] ss:$8 sps:$4 sm:$0xff]   ;;  %v3776_v35 = vld [vmem:[#allocation8 + $0x56c] ss:$16 sps:$4 sm:$0xff]  }
 0x1cf   :  { %v3866_v36 = vld [vmem:[#allocation10 + $0x94] ss:$8 sps:$4 sm:$0xff]  }
 0x1d1   :  { %2145 = vmatpush1.bf16.msra.mxu0 %v3723_v42  ;;  %2231 = vmatpush1.bf16.msra.mxu1 %v3726_v14  ;;  %v3864_v42 = vld [vmem:[#allocation10 + $0x90] ss:$8 sps:$4 sm:$0xff]   ;;  %v3779_v14 = vld [vmem:[#allocation8 + $0x58c] ss:$16 sps:$4 sm:$0xff]  }
 0x1d2   :  { %2146 = vmatprep.subr.bf16.mxu0 %v3731_v43  ;;  %2232 = vmatprep.subr.bf16.mxu1 %v3734_v44  ;;  %v3869_v43 = vld [vmem:[#allocation10 + $0xa4] ss:$8 sps:$4 sm:$0xff]   ;;  %v3777_v44 = vld [vmem:[#allocation8 + $0x588] ss:$16 sps:$4 sm:$0xff]  }
 0x1d5   :  { %2147 = vmatpush1.bf16.msra.mxu0 %v3729_v30  ;;  %2233 = vmatpush1.bf16.msra.mxu1 %v3732_v58  ;;  %v3782_v30 = vld [vmem:[#allocation8 + $0x5ac] ss:$16 sps:$4 sm:$0xff]  }
 0x1d6   :  { %2148 = vmatprep.subr.bf16.mxu0 %v3737_v48  ;;  %2243 = vmatprep.subr.bf16.mxu1 %v3740_v8  ;;  %v3872_v58 = vld [vmem:[#allocation10 + $0xb4] ss:$8 sps:$4 sm:$0xff]   ;;  %v3780_v48 = vld [vmem:[#allocation8 + $0x5a8] ss:$16 sps:$4 sm:$0xff]  }
 0x1d7   :  { %v3870_v8 = vld [vmem:[#allocation10 + $0xb0] ss:$8 sps:$4 sm:$0xff]  }
 0x1d8   :  { %2235 = vmatmul.mubr.bf16.vlgmr.msra.gmra.mrb[4].mxu1 %v4321_v7  ;;  %v3842_v7 = vld [vmem:[#allocation10 + $0x14] ss:$8 sps:$4 sm:$0xff]  }
 0x1d9   :  { %2149 = vmatpush1.bf16.msra.mxu0 %v3735_v52  ;;  %2244 = vmatpush1.bf16.msra.mxu1 %v3738_v53  ;;  %v3875_v52 = vld [vmem:[#allocation10 + $0xc4] ss:$8 sps:$4 sm:$0xff]   ;;  %v3783_v53 = vld [vmem:[#allocation8 + $0x5c8] ss:$16 sps:$4 sm:$0xff]  }
 0x1da   :  { %2275 = vmatprep.mubr.bf16.mxu1 %v4330_v26  ;;  %2150 = vmatprep.subr.bf16.mxu0 %v3743_v54  ;;  %v3840_v26 = vld [vmem:[#allocation10 + $0x10] ss:$8 sps:$4 sm:$0xff]   ;;  %v3873_v54 = vld [vmem:[#allocation10 + $0xc0] ss:$8 sps:$4 sm:$0xff]  }
 0x1db   :  { %2245 = vmatprep.subr.bf16.mxu1 %v3746_v55  ;;  %v3788_v55 = vld [vmem:[#allocation8 + $0x5ec] ss:$16 sps:$4 sm:$0xff]  }
 0x1dd   :  { %2151 = vmatpush1.bf16.msra.mxu0 %v3741_v40  ;;  %2246 = vmatpush1.bf16.msra.mxu1 %v3744_v57  ;;  %v3786_v40 = vld [vmem:[#allocation8 + $0x5e8] ss:$16 sps:$4 sm:$0xff]  }
 0x1de   :  { %2247 = vmatprep.subr.bf16.mxu1 %v3749_v59  ;;  %2729 = vmatprep.subr.bf16.mxu0 %v3839_v29  ;;  %v3876_v57 = vld [vmem:[#allocation10 + $0xd0] ss:$8 sps:$4 sm:$0xff]   ;;  %v3791_v59 = vld [vmem:[#allocation8 + $0x60c] ss:$16 sps:$4 sm:$0xff]  }
 0x1df   :  { %v3789_v29 = vld [vmem:[#allocation8 + $0x608] ss:$16 sps:$4 sm:$0xff]  }
 0x1e0   :  { %2153 = vmatmul.mubr.bf16.vlgmr.msra.gmra.mrb[16].mxu0 %v4356_v60 }
 0x1e1   :  { %2248 = vmatpush1.bf16.msra.mxu1 %v3747_v61  ;;  %2730 = vmatpush1.bf16.msra.mxu0 %v3837_v62  ;;  %v3794_v61 = vld [vmem:[#allocation8 + $0x62c] ss:$16 sps:$4 sm:$0xff]   ;;  %v3792_v62 = vld [vmem:[#allocation8 + $0x628] ss:$16 sps:$4 sm:$0xff]  }
 0x1e2   :  { %2249 = vmatprep.subr.bf16.mxu1 %v3752_v63  ;;  %2731 = vmatprep.subr.bf16.mxu0 %v3842_v7  ;;  %v3797_v63 = vld [vmem:[#allocation8 + $0x64c] ss:$16 sps:$4 sm:$0xff]   ;;  %v3795_v7 = vld [vmem:[#allocation8 + $0x648] ss:$16 sps:$4 sm:$0xff]  }
 0x1e5   :  { %2250 = vmatpush1.bf16.msra.mxu1 %v3750_v0  ;;  %2732 = vmatpush1.bf16.msra.mxu0 %v3840_v26  ;;  %v3800_v0 = vld [vmem:[#allocation8 + $0x66c] ss:$16 sps:$4 sm:$0xff]   ;;  %v3798_v26 = vld [vmem:[#allocation8 + $0x668] ss:$16 sps:$4 sm:$0xff]  }
 0x1e6   :  { %2251 = vmatprep.subr.bf16.mxu1 %v3755_v1  ;;  %2733 = vmatprep.subr.bf16.mxu0 %v3845_v2  ;;  %v3803_v1 = vld [vmem:[#allocation8 + $0x68c] ss:$16 sps:$4 sm:$0xff]   ;;  %v3801_v2 = vld [vmem:[#allocation8 + $0x688] ss:$16 sps:$4 sm:$0xff]  }
 0x1e9   :  { %2252 = vmatpush1.bf16.msra.mxu1 %v3753_v3  ;;  %2734 = vmatpush1.bf16.msra.mxu0 %v3843_v4  ;;  %v3806_v3 = vld [vmem:[#allocation8 + $0x6ac] ss:$16 sps:$4 sm:$0xff]  }
 0x1ea   :  { %2253 = vmatprep.subr.bf16.mxu1 %v3758_v5  ;;  %2735 = vmatprep.subr.bf16.mxu0 %v3848_v6  ;;  %v3809_v4 = vld [vmem:[#allocation8 + $0x6cc] ss:$16 sps:$4 sm:$0xff]  }
 0x1ed   :  { %2254 = vmatpush1.bf16.msra.mxu1 %v3756_v9  ;;  %2736 = vmatpush1.bf16.msra.mxu0 %v3846_v10  ;;  %v3807_v9 = vld [vmem:[#allocation8 + $0x6c8] ss:$16 sps:$4 sm:$0xff]  }
 0x1ee   :  { %2255 = vmatprep.subr.bf16.mxu1 %v3761_v11  ;;  %2737 = vmatprep.subr.bf16.mxu0 %v3851_v12  ;;  %v3812_v11 = vld [vmem:[#allocation8 + $0x6ec] ss:$16 sps:$4 sm:$0xff]   ;;  %v3810_v12 = vld [vmem:[#allocation8 + $0x6e8] ss:$16 sps:$4 sm:$0xff]  }
 0x1f1   :  { %2256 = vmatpush1.bf16.msra.mxu1 %v3759_v13  ;;  %2738 = vmatpush1.bf16.msra.mxu0 %v3849_v15  ;;  %v3815_v13 = vld [vmem:[#allocation8 + $0x70c] ss:$16 sps:$4 sm:$0xff]  }
 0x1f2   :  { %2257 = vmatprep.subr.bf16.mxu1 %v3764_v16  ;;  %2739 = vmatprep.subr.bf16.mxu0 %v3854_v17  ;;  %v3881_v15 = vld [vmem:[#allocation10 + $0xe4] ss:$8 sps:$4 sm:$0xff]   ;;  %v3879_v16 = vld [vmem:[#allocation10 + $0xe0] ss:$8 sps:$4 sm:$0xff]  }
 0x1f3   :  { %v3813_v17 = vld [vmem:[#allocation8 + $0x708] ss:$16 sps:$4 sm:$0xff]  }
 0x1f5   :  { %2258 = vmatpush1.bf16.msra.mxu1 %v3762_v18  ;;  %2740 = vmatpush1.bf16.msra.mxu0 %v3852_v19  ;;  %v3818_v18 = vld [vmem:[#allocation8 + $0x72c] ss:$16 sps:$4 sm:$0xff]  }
 0x1f6   :  { %2259 = vmatprep.subr.bf16.mxu1 %v3767_v20  ;;  %2741 = vmatprep.subr.bf16.mxu0 %v3857_v21  ;;  %v3884_v19 = vld [vmem:[#allocation10 + $0xf4] ss:$8 sps:$4 sm:$0xff]   ;;  %v3882_v20 = vld [vmem:[#allocation10 + $0xf0] ss:$8 sps:$4 sm:$0xff]  }
 0x1f7   :  { %v3816_v21 = vld [vmem:[#allocation8 + $0x728] ss:$16 sps:$4 sm:$0xff]  }
 0x1f9   :  { %2260 = vmatpush1.bf16.msra.mxu1 %v3765_v22  ;;  %2742 = vmatpush1.bf16.msra.mxu0 %v3855_v23  ;;  %v3821_v22 = vld [vmem:[#allocation8 + $0x74c] ss:$16 sps:$4 sm:$0xff]  }
 0x1fa   :  { %2261 = vmatprep.subr.bf16.mxu1 %v3770_v24  ;;  %2743 = vmatprep.subr.bf16.mxu0 %v3860_v25  ;;  %v3887_v23 = vld [vmem:[#allocation10 + $0x104] ss:$8 sps:$4 sm:$0xff]   ;;  %v3819_v24 = vld [vmem:[#allocation8 + $0x748] ss:$16 sps:$4 sm:$0xff]  }
 0x1fb   :  { %v3824_v25 = vld [vmem:[#allocation8 + $0x76c] ss:$16 sps:$4 sm:$0xff]  }
 0x1fd   :  { %2262 = vmatpush1.bf16.msra.mxu1 %v3768_v27  ;;  %2744 = vmatpush1.bf16.msra.mxu0 %v3858_v28  ;;  %v3822_v27 = vld [vmem:[#allocation8 + $0x768] ss:$16 sps:$4 sm:$0xff]   ;;  %v3827_v28 = vld [vmem:[#allocation8 + $0x78c] ss:$16 sps:$4 sm:$0xff]  }
 0x1fe   :  { %2263 = vmatprep.subr.bf16.mxu1 %v3773_v31  ;;  %2745 = vmatprep.subr.bf16.mxu0 %v3863_v32  ;;  %v3825_v31 = vld [vmem:[#allocation8 + $0x788] ss:$16 sps:$4 sm:$0xff]   ;;  %v3830_v32 = vld [vmem:[#allocation8 + $0x7ac] ss:$16 sps:$4 sm:$0xff]  }
 0x201   :  { %2264 = vmatpush1.bf16.msra.mxu1 %v3771_v33  ;;  %2746 = vmatpush1.bf16.msra.mxu0 %v3861_v34  ;;  %v3828_v33 = vld [vmem:[#allocation8 + $0x7a8] ss:$16 sps:$4 sm:$0xff]   ;;  %v3833_v34 = vld [vmem:[#allocation8 + $0x7cc] ss:$16 sps:$4 sm:$0xff]  }
 0x202   :  { %2265 = vmatprep.subr.bf16.mxu1 %v3776_v35  ;;  %2747 = vmatprep.subr.bf16.mxu0 %v3866_v36  ;;  %v3831_v35 = vld [vmem:[#allocation8 + $0x7c8] ss:$16 sps:$4 sm:$0xff]   ;;  %v3836_v36 = vld [vmem:[#allocation8 + $0x7ec] ss:$16 sps:$4 sm:$0xff]  }
 0x205   :  { %2266 = vmatpush1.bf16.msra.mxu1 %v3774_v37  ;;  %2748 = vmatpush1.bf16.msra.mxu0 %v3864_v42  ;;  %v3834_v37 = vld [vmem:[#allocation8 + $0x7e8] ss:$16 sps:$4 sm:$0xff]   ;;  %v4365_v42 = vld [vmem:[%s4413_s4] sm:$0xf] }
 0x206   :  { %2267 = vmatprep.subr.bf16.mxu1 %v3779_v14  ;;  %2749 = vmatprep.subr.bf16.mxu0 %v3869_v43  ;;  %v700_v14 = vrot.slane %v4365_v42, %v4298_v39  ;;  %v704_v43 = vrot.slane %v4365_v42, %v4303_v41 }
 0x209   :  { %2268 = vmatpush1.bf16.msra.mxu1 %v3777_v44  ;;  %2750 = vmatpush1.bf16.msra.mxu0 %v3867_v46 }
 0x20a   :  { %2269 = vmatprep.subr.bf16.mxu1 %v3782_v30  ;;  %2751 = vmatprep.subr.bf16.mxu0 %v3872_v58 }
 0x20d   :  { %2270 = vmatpush1.bf16.msra.mxu1 %v3780_v48  ;;  %2752 = vmatpush1.bf16.msra.mxu0 %v3870_v8  ;;  %v3933_v8 = vld [vmem:[#allocation11 + $0x40] sm:$0xff]  }
 0x20e   :  { %2271 = vmatprep.subr.bf16.mxu1 %v3785_v51  ;;  %2753 = vmatprep.subr.bf16.mxu0 %v3875_v52  ;;  %v3934_v51 = vld [vmem:[#allocation11] sm:$0xff]   ;;  %v3935_v52 = vld [vmem:[#allocation11 + $0x48] sm:$0xff]  }
 0x211   :  { %2272 = vmatpush1.bf16.msra.mxu1 %v3783_v53  ;;  %2754 = vmatpush1.bf16.msra.mxu0 %v3873_v54 }
 0x212   :  { %2273 = vmatprep.subr.bf16.mxu1 %v3788_v55  ;;  %2755 = vmatprep.subr.bf16.mxu0 %v3878_v56 }
 0x215   :  { %2274 = vmatpush1.bf16.msra.mxu1 %v3786_v40  ;;  %2756 = vmatpush1.bf16.msra.mxu0 %v3876_v57  ;;  %v3936_v40 = vld [vmem:[#allocation11 + $0x8] sm:$0xff]   ;;  %v3937_v57 = vld [vmem:[#allocation11 + $0x50] sm:$0xff]  }
 0x216   :  { %2284 = vmatprep.subr.bf16.mxu1 %v3791_v59  ;;  %2757 = vmatprep.subr.bf16.mxu0 %v3881_v15  ;;  %v3903_v15 = vld [vmem:[#allocation10 + $0x160] ss:$8 sps:$4 sm:$0xff]  }
 0x218   :  { %2276 = vmatmul.mubr.bf16.vlgmr.msra.gmra.mrb[4].mxu1 %v4345_v45  ;;  %v3804_v45 = vld [vmem:[#allocation8 + $0x6a8] ss:$16 sps:$4 sm:$0xff]  }
 0x219   :  { %2285 = vmatpush1.bf16.msra.mxu1 %v3789_v29  ;;  %2316 = vmatprep.mubr.bf16.mxu1 %v4347_v49  ;;  %v3885_v29 = vld [vmem:[#allocation10 + $0x100] ss:$8 sps:$4 sm:$0xff]  }
 0x21a   :  { %2286 = vmatprep.subr.bf16.mxu1 %v3794_v61  ;;  %2758 = vmatpush1.bf16.msra.mxu0 %v3879_v16  ;;  %v3908_v16 = vld [vmem:[#allocation10 + $0x174] ss:$8 sps:$4 sm:$0xff]  }
 0x21b   :  { %2759 = vmatprep.subr.bf16.mxu0 %v3884_v19  ;;  %v3909_v19 = vld [vmem:[#allocation10 + $0x180] ss:$8 sps:$4 sm:$0xff]  }
 0x21d   :  { %2287 = vmatpush1.bf16.msra.mxu1 %v3792_v62  ;;  %v3890_v62 = vld [vmem:[#allocation10 + $0x114] ss:$8 sps:$4 sm:$0xff]  }
 0x21e   :  { %2288 = vmatprep.subr.bf16.mxu1 %v3797_v63  ;;  %2760 = vmatpush1.bf16.msra.mxu0 %v3882_v20  ;;  %v3938_v63 = vld [vmem:[#allocation11 + $0x10] sm:$0xff]  }
 0x21f   :  { %2770 = vmatprep.subr.bf16.mxu0 %v3887_v23  ;;  %v3914_v20 = vld [vmem:[#allocation10 + $0x194] ss:$8 sps:$4 sm:$0xff]   ;;  %v3915_v23 = vld [vmem:[#allocation10 + $0x1a0] ss:$8 sps:$4 sm:$0xff]  }
 0x221   :  { %2289 = vmatpush1.bf16.msra.mxu1 %v3795_v7  ;;  %v3939_v7 = vld [vmem:[#allocation11 + $0x58] sm:$0xff]  }
 0x222   :  { %2290 = vmatprep.subr.bf16.mxu1 %v3800_v0  ;;  %v3888_v0 = vld [vmem:[#allocation10 + $0x110] ss:$8 sps:$4 sm:$0xff]  }
 0x225   :  { %2291 = vmatpush1.bf16.msra.mxu1 %v3798_v26  ;;  %v3893_v26 = vld [vmem:[#allocation10 + $0x124] ss:$8 sps:$4 sm:$0xff]  }
 0x226   :  { %2292 = vmatprep.subr.bf16.mxu1 %v3803_v1  ;;  %v3940_v1 = vld [vmem:[#allocation11 + $0x18] sm:$0xff]  }
 0x229   :  { %2293 = vmatpush1.bf16.msra.mxu1 %v3801_v2  ;;  %v3941_v2 = vld [vmem:[#allocation11 + $0x60] sm:$0xff]  }
 0x22a   :  { %2294 = vmatprep.subr.bf16.mxu1 %v3806_v3  ;;  %v3891_v3 = vld [vmem:[#allocation10 + $0x120] ss:$8 sps:$4 sm:$0xff]  }
 0x22b   :  { %v2031_v49 = vpop.f32.mrb[0].mxu1 }
 0x22c   :  { %v2033_v5 = vpop.f32.mrb[1].mxu1  ;;  %v2032_v44 = vadd.f32 %v2031_v49, %v700_v14  ;;  %v3943_v49 = vld [vmem:[#allocation11 + $0x68] sm:$0xff]   ;;  %v712_v14 = vrot.slane %v4365_v42, %v149_v50  ;;  %v2397_v50 = vld [vmem:[%s4415_s6] sm:$0x3]  ;;  %s3009_s6 = sshll.u32 %s4152_s27, 4  ;;  %s3010_s6 = int_to_ptr.vmem [resolvable:$true] %s3009_s6 }
 0x22d   :  { %2295 = vmatpush1.bf16.msra.mxu1 %v3804_v45  ;;  %v2035_v6 = vpop.f32.mrb[2].mxu1  ;;  %v2034_v46 = vadd.f32 %v2033_v5, %v704_v43  ;;  %v3896_v45 = vld [vmem:[#allocation10 + $0x134] ss:$8 sps:$4 sm:$0xff]   ;;  %v3894_v5 = vld [vmem:[#allocation10 + $0x130] ss:$8 sps:$4 sm:$0xff]   ;;  %s4081_s29 = scalar_lea.vmem %s3010_s6, 256  ;;  %p4086_p7 = scmp.lt.s32.totalorder %s3010_s6, %s3010_s6 }
 0x22e   :  { %v2036_v10 = vpop.f32.mrb[3].mxu1  ;;  %2296 = vmatprep.subr.bf16.mxu1 %v3809_v4  ;;  %v3942_v4 = vld [vmem:[#allocation11 + $0x20] sm:$0xff]   ;;  %p4082_p6 = scmp.ne.s32.totalorder %s3010_s6, %s4081_s29  ;;  %p4087_p8 = scmp.lt.s32.totalorder %s4081_s29, %s4081_s29 }
 0x22f   :  { %v3899_v6 = vld [vmem:[#allocation10 + $0x144] ss:$8 sps:$4 sm:$0xff]   ;;  %v3897_v10 = vld [vmem:[#allocation10 + $0x140] ss:$8 sps:$4 sm:$0xff]  }
 0x230   :  { %p4088_p9 = por %p4087_p8, %p4086_p7 }
 0x231   :  { %2297 = vmatpush1.bf16.msra.mxu1 %v3807_v9  ;;  %v3944_v9 = vld [vmem:[#allocation11 + $0x28] sm:$0xff]  }
 0x232   :  { %2298 = vmatprep.subr.bf16.mxu1 %v3812_v11  ;;  %v3902_v11 = vld [vmem:[#allocation10 + $0x154] ss:$8 sps:$4 sm:$0xff]   ;;  %p4089_p10 = pnand %p4088_p9, %p4082_p6 }
 0x235   :  { %2299 = vmatpush1.bf16.msra.mxu1 %v3810_v12  ;;  %v3900_v12 = vld [vmem:[#allocation10 + $0x150] ss:$8 sps:$4 sm:$0xff]  }
 0x236   :  { %2300 = vmatprep.subr.bf16.mxu1 %v3815_v13  ;;  %v3905_v13 = vld [vmem:[#allocation10 + $0x164] ss:$8 sps:$4 sm:$0xff]  }
 0x239   :  { %2301 = vmatpush1.bf16.msra.mxu1 %v3813_v17  ;;  %v3906_v17 = vld [vmem:[#allocation10 + $0x170] ss:$8 sps:$4 sm:$0xff]  }
 0x23a   :  { %2302 = vmatprep.subr.bf16.mxu1 %v3818_v18  ;;  %v3911_v18 = vld [vmem:[#allocation10 + $0x184] ss:$8 sps:$4 sm:$0xff]  }
 0x23d   :  { %2303 = vmatpush1.bf16.msra.mxu1 %v3816_v21  ;;  %v3912_v21 = vld [vmem:[#allocation10 + $0x190] ss:$8 sps:$4 sm:$0xff]  }
 0x23e   :  { %2304 = vmatprep.subr.bf16.mxu1 %v3821_v22  ;;  %v3917_v22 = vld [vmem:[#allocation10 + $0x1a4] ss:$8 sps:$4 sm:$0xff]  }
 0x241   :  { %2305 = vmatpush1.bf16.msra.mxu1 %v3819_v24  ;;  %v3920_v24 = vld [vmem:[#allocation10 + $0x1b4] ss:$8 sps:$4 sm:$0xff]  }
 0x242   :  { %2306 = vmatprep.subr.bf16.mxu1 %v3824_v25  ;;  %v3918_v25 = vld [vmem:[#allocation10 + $0x1b0] ss:$8 sps:$4 sm:$0xff]  }
 0x245   :  { %2307 = vmatpush1.bf16.msra.mxu1 %v3822_v27  ;;  %v3923_v27 = vld [vmem:[#allocation10 + $0x1c4] ss:$8 sps:$4 sm:$0xff]  }
 0x246   :  { %2308 = vmatprep.subr.bf16.mxu1 %v3827_v28  ;;  %v3921_v28 = vld [vmem:[#allocation10 + $0x1c0] ss:$8 sps:$4 sm:$0xff]  }
 0x249   :  { %2309 = vmatpush1.bf16.msra.mxu1 %v3825_v31  ;;  %v3926_v31 = vld [vmem:[#allocation10 + $0x1d4] ss:$8 sps:$4 sm:$0xff]  }
 0x24a   :  { %2310 = vmatprep.subr.bf16.mxu1 %v3830_v32  ;;  %v3924_v32 = vld [vmem:[#allocation10 + $0x1d0] ss:$8 sps:$4 sm:$0xff]  }
 0x24d   :  { %2311 = vmatpush1.bf16.msra.mxu1 %v3828_v33  ;;  %v3929_v33 = vld [vmem:[#allocation10 + $0x1e4] ss:$8 sps:$4 sm:$0xff]  }
 0x24e   :  { %2312 = vmatprep.subr.bf16.mxu1 %v3833_v34  ;;  %v3927_v34 = vld [vmem:[#allocation10 + $0x1e0] ss:$8 sps:$4 sm:$0xff]  }
 0x251   :  { %2313 = vmatpush1.bf16.msra.mxu1 %v3831_v35  ;;  %v3932_v35 = vld [vmem:[#allocation10 + $0x1f4] ss:$8 sps:$4 sm:$0xff]  }
 0x252   :  { %2314 = vmatprep.subr.bf16.mxu1 %v3836_v36  ;;  %v3930_v36 = vld [vmem:[#allocation10 + $0x1f0] ss:$8 sps:$4 sm:$0xff]  }
 0x255   :  { %2315 = vmatpush1.bf16.msra.mxu1 %v3834_v37  ;;  %v708_v37 = vrot.slane %v4365_v42, %v145_v47  ;;  %v3947_v47 = vld [vmem:[#allocation11 + $0x78] sm:$0xff]   ;;  %v2402_v42 = vrot.slane %v2397_v50, %v4298_v39 }
 0x256   :  { %3382 = vmatprep.subr.bf16.mxu1 %v3933_v8 }
 0x258   :  { %2317 = vmatmul.mubr.bf16.vlgmr.msra.gmra.mrb[4].mxu1 %v4356_v60 }
 0x259   :  { %3383 = vmatpush3.bf16.msra.mxu1 %v3934_v51 }
 0x25a   :  { %3384 = vmatprep.subr.bf16.mxu1 %v3935_v52 }
 0x25d   :  { %3385 = vmatpush3.bf16.msra.mxu1 %v3936_v40 }
 0x25e   :  { %3386 = vmatprep.subr.bf16.mxu1 %v3937_v57 }
 0x261   :  { %3387 = vmatpush3.bf16.msra.mxu1 %v3938_v63 }
 0x262   :  { %3388 = vmatprep.subr.bf16.mxu1 %v3939_v7 }
 0x265   :  { %3389 = vmatpush3.bf16.msra.mxu1 %v3940_v1 }
 0x266   :  { %3390 = vmatprep.subr.bf16.mxu1 %v3941_v2 }
 0x269   :  { %3391 = vmatpush3.bf16.msra.mxu1 %v3942_v4 }
 0x26a   :  { %3392 = vmatprep.subr.bf16.mxu1 %v3943_v49 }
 0x26d   :  { %3393 = vmatpush3.bf16.msra.mxu1 %v3944_v9 }
 0x2b3   :  { %v2154_v30 = vpop.f32.mrb[16].mxu0 }
 0x2b4   :  { %v3405_v58 = vadd.f32 %v2154_v30, %v2032_v44  ;;  %v2156_v48 = vpop.f32.mrb[17].mxu0 }
 0x2b5   :  { %v3407_v60 = vadd.f32 %v2156_v48, %v2034_v46  ;;  %v2158_v53 = vpop.f32.mrb[18].mxu0 }
 0x2b6   :  { %v2325_v54 = vmax.f32 %v3405_v58, 0.0  ;;  %v2159_v55 = vpop.f32.mrb[19].mxu0  ;;  %v3945_v53 = vld [vmem:[#allocation11 + $0x70] sm:$0xff]  }
 0x2b7   :  { %v2326_v56 = vmax.f32 %v3407_v60, 0.0  ;;  %3394 = vmatprep.subr.bf16.mxu1 %v3945_v53  ;;  %v2406_v55 = vrot.slane %v2397_v50, %v4303_v41 }
 0x2b8   :  { %v2329_v61 = vpack.c.bf16 %v2325_v54, %v2325_v54  ;;  %v3946_v54 = vld [vmem:[#allocation11 + $0x30] sm:$0xff]  }
 0x2b9   :  { %v2330_v59 = vpack.c.bf16 %v2326_v56, %v2326_v56  ;;  %3395 = vmatpush3.bf16.msra.mxu1 %v3946_v54 }
 0x2ba   :  { %3396 = vmatprep.subr.bf16.mxu1 %v3947_v47 }
 0x2bb   :  { %2761 = vmatprep.mubr.bf16.mxu0 %v2330_v59 }
 0x2bc   :  { %2762 = vmatmul.mubr.bf16.vlgmr.msra.gmra.mrb[20].mxu0 %v2329_v61 }
 0x2bd   :  { %2771 = vmatpush1.bf16.msra.mxu0 %v3885_v29  ;;  %3397 = vmatpush3.bf16.msra.mxu1 %v3948_v38 }
 0x2be   :  { %2772 = vmatprep.subr.bf16.mxu0 %v3890_v62 }
 0x2c1   :  { %2773 = vmatpush1.bf16.msra.mxu0 %v3888_v0 }
 0x2c2   :  { %2774 = vmatprep.subr.bf16.mxu0 %v3893_v26 }
 0x2c5   :  { %2775 = vmatpush1.bf16.msra.mxu0 %v3891_v3 }
 0x2c6   :  { %2776 = vmatprep.subr.bf16.mxu0 %v3896_v45 }
 0x2c9   :  { %2777 = vmatpush1.bf16.msra.mxu0 %v3894_v5 }
 0x2ca   :  { %2778 = vmatprep.subr.bf16.mxu0 %v3899_v6 }
 0x2cd   :  { %2779 = vmatpush1.bf16.msra.mxu0 %v3897_v10 }
 0x2ce   :  { %2780 = vmatprep.subr.bf16.mxu0 %v3902_v11 }
 0x2d1   :  { %2781 = vmatpush1.bf16.msra.mxu0 %v3900_v12 }
 0x2d2   :  { %2782 = vmatprep.subr.bf16.mxu0 %v3905_v13 }
 0x2d5   :  { %2783 = vmatpush1.bf16.msra.mxu0 %v3903_v15 }
 0x2d6   :  { %2784 = vmatprep.subr.bf16.mxu0 %v3908_v16 }
 0x2d9   :  { %2785 = vmatpush1.bf16.msra.mxu0 %v3906_v17 }
 0x2da   :  { %2786 = vmatprep.subr.bf16.mxu0 %v3911_v18 }
 0x2dd   :  { %2787 = vmatpush1.bf16.msra.mxu0 %v3909_v19 }
 0x2de   :  { %2788 = vmatprep.subr.bf16.mxu0 %v3914_v20 }
 0x2e1   :  { %2789 = vmatpush1.bf16.msra.mxu0 %v3912_v21 }
 0x2e2   :  { %2790 = vmatprep.subr.bf16.mxu0 %v3917_v22 }
 0x2e5   :  { %2791 = vmatpush1.bf16.msra.mxu0 %v3915_v23 }
 0x2e6   :  { %2792 = vmatprep.subr.bf16.mxu0 %v3920_v24 }
 0x2e9   :  { %2793 = vmatpush1.bf16.msra.mxu0 %v3918_v25 }
 0x2ea   :  { %2794 = vmatprep.subr.bf16.mxu0 %v3923_v27 }
 0x2ed   :  { %2795 = vmatpush1.bf16.msra.mxu0 %v3921_v28 }
 0x2ee   :  { %2796 = vmatprep.subr.bf16.mxu0 %v3926_v31 }
 0x2f1   :  { %2797 = vmatpush1.bf16.msra.mxu0 %v3924_v32 }
 0x2f2   :  { %2798 = vmatprep.subr.bf16.mxu0 %v3929_v33 }
 0x2f5   :  { %2799 = vmatpush1.bf16.msra.mxu0 %v3927_v34 }
 0x2f6   :  { %2800 = vmatprep.subr.bf16.mxu0 %v3932_v35 }
 0x2f9   :  { %2801 = vmatpush1.bf16.msra.mxu0 %v3930_v36 }
 0x32b   :  { %v2318_v43 = vpop.f32.mrb[4].mxu1 }
 0x32c   :  { %v3408_v44 = vadd.f32 %v2318_v43, %v708_v37  ;;  %v2320_v46 = vpop.f32.mrb[5].mxu1 }
 0x32d   :  { %v3409_v30 = vadd.f32 %v2320_v46, %v712_v14  ;;  %v2322_v58 = vpop.f32.mrb[6].mxu1 }
 0x32e   :  { %v2327_v48 = vmax.f32 %v3408_v44, 0.0  ;;  %v2323_v8 = vpop.f32.mrb[7].mxu1 }
 0x32f   :  { %v2328_v51 = vmax.f32 %v3409_v30, 0.0 }
 0x330   :  { %v2331_v60 = vpack.c.bf16 %v2327_v48, %v2327_v48 }
 0x331   :  { %v2332_v52 = vpack.c.bf16 %v2328_v51, %v2328_v51 }
 0x333   :  { %2802 = vmatprep.mubr.bf16.mxu0 %v2332_v52 }
 0x334   :  { %2803 = vmatmul.mubr.bf16.vlgmr.msra.gmra.mrb[20].mxu0 %v2331_v60 }
 0x407   :  { %v2804_v56 = vpop.f32.mrb[20].mxu0 }
 0x408   :  { %v3410_v40 = vadd.f32 %v2804_v56, %v2402_v42  ;;  %v2806_v57 = vpop.f32.mrb[21].mxu0 }
 0x409   :  { %v3411_v59 = vadd.f32 %v2806_v57, %v2406_v55  ;;  %v2808_v29 = vpop.f32.mrb[22].mxu0 }
 0x40a   :  { %v2811_v61 = vmax.f32 %v3410_v40, 0.0  ;;  %v2809_v62 = vpop.f32.mrb[23].mxu0 }
 0x40b   :  { %v2812_v63 = vmax.f32 %v3411_v59, 0.0 }
 0x40c   :  { %2813 = vst [vmem:[#allocation14] sm:$0xff] %v2811_v61  ;;  %v2815_v0 = vpack.c.bf16 %v2811_v61, %v2811_v61 }
 0x40d   :  { %2814 = vst [vmem:[#allocation14 + $0x8] sm:$0xff] %v2812_v63  ;;  %v2816_v7 = vpack.c.bf16 %v2812_v63, %v2812_v63 }
 0x40f   :  { %2984 = vmatprep.mubr.bf16.mxu1 %v2816_v7 }
 0x410   :  { %2985 = vmatmul.mubr.bf16.vlgmr.msra.gmra.mrb[8].mxu1 %v2815_v0 }
 0x411   :  { %4092 = shalt.err (!%p4089_p10)
}
 0x412   :  { %s4093_s3 = scalar_lea.hbm %s4419_s10, 256 }
 0x413   :  { %p4094_p11 = scmp.ne.s32.totalorder %s4419_s10, %s4093_s3  ;;  %p4097_p12 = scmp.lt.u32.totalorder %s4093_s3, %s4419_s10 }
 0x415   :  { %p4099_p13 = pnand %p4097_p12, %p4094_p11 }
 0x417   :  { %4102 = shalt.err (!%p4099_p13)
}
 0x418   :  { %3012 = dma.vmem_to_hbm [thread:$0]  %s3010_s6, 256, %s4419_s10, [#allocation15]   ;;  %v3365_v41 = vld [vmem:[%s4417_s8] ss:$0 sm:$0xff] }
 0x419   :  { %s4153_s1 = smov [#allocation13]  }
 0x41a   :  { %s2999_s14 = sshll.u32 %s4153_s1, 4  ;;  %s3000_s14 = int_to_ptr.vmem [resolvable:$true] %s2999_s14 }
 0x41b   :  { %s4103_s18 = scalar_lea.vmem %s3000_s14, 128  ;;  %p4108_p1 = scmp.lt.s32.totalorder %s3000_s14, %s3000_s14 }
 0x41c   :  { %p4104_p0 = scmp.ne.s32.totalorder %s3000_s14, %s4103_s18  ;;  %p4109_p2 = scmp.lt.s32.totalorder %s4103_s18, %s4103_s18 }
 0x41e   :  { %p4110_p3 = por %p4109_p2, %p4108_p1 }
 0x420   :  { %p4111_p4 = pnand %p4110_p3, %p4104_p0 }
 0x4e3   :  { %v3398_v39 = vpop.f32.mrb[8].mxu1 }
 0x4e4   :  { %v3399_v26 = vpop.f32.mrb[9].mxu1 }
 0x4e5   :  { %v3400_v1 = vadd.f32 %v3399_v26, %v3398_v39  ;;  %v3401_v2 = vpop.f32.mrb[10].mxu1 }
 0x4e6   :  { %v3402_v3 = vpop.f32.mrb[11].mxu1 }
 0x4e7   :  { %v2987_v45 = vadd.f32 %v3400_v1, %v3365_v41 }
 0x4e9   :  { %2992 = vst [vmem:[#allocation13] sm:$0xff] %v2987_v45 }
 0x4ea   :  { %4114 = shalt.err (!%p4111_p4)
}
 0x4eb   :  { %s4115_s8 = scalar_lea.hbm %s4418_s9, 128 }
 0x4ec   :  { %p4116_p5 = scmp.ne.s32.totalorder %s4418_s9, %s4115_s8  ;;  %p4119_p6 = scmp.lt.u32.totalorder %s4115_s8, %s4418_s9 }
 0x4ee   :  { %p4121_p7 = pnand %p4119_p6, %p4116_p5 }
 0x4f0   :  { %4124 = shalt.err (!%p4121_p7)
}
 0x4f1   :  { %3002 = dma.vmem_to_hbm [thread:$0]  %s3000_s14, 128, %s4418_s9, [#allocation4]  }
 0x4f2   :  { %4133 = dma.done.wait [#allocation4], 128  }
 0x4f3   :  { %4134 = vsyncadd [#allocation4], 4294967168 }
 0x4f4   :  { %4135 = dma.done.wait [#allocation15], 256  }
 0x4f5   :  { %4136 = vsyncadd [#allocation15], 4294967040 }
 0x4f6   :  { %3019 = vsyncpa [#allocation3], 1 }
 0x4f7   :  { %3020 = vsyncpa [#allocation6], 1 }
 0x4f8   :  { %3021 = vsyncpa [#allocation9], 1 }
 0x4f9   :  { %3022 = vsyncpa [#allocation12], 1 }
 0x4fa   :  { %3023 = vsyncpa [#allocation4], 1 }
 0x4fb   :  { %3024 = vsyncpa [#allocation15], 1 }

</bundles_post_ra>
